<compile_context>
chip_gen: v7x
topology: tpu7x:2x2x1
jax: 0.10.0
libtpu: 0.0.40
codegen_flags: <defaults>
</compile_context>

<pallas_src>
import functools

import jax
import jax.numpy as jnp
from jax import lax
from jax.experimental import pallas as pl
from jax.experimental.pallas import tpu as pltpu


N_PAD = 128   # padded node count (lane-dense adjacency / one-hot matmuls)
F_PAD = 128   # padded feature width (lane-dense activations / weights / output)


# ----------------------------- Pallas kernel -------------------------------
def gnn_kernel(ids_ref, src_ref, dst_ref, emb_ref, w_ref, b_ref, o_ref):
    """Fully fused: embedding gather + adjacency build + gcn_norm + 3 GCN layers."""
    n_pad = emb_ref.shape[0]
    e_pad = src_ref.shape[0]

    # ---- embedding gather via one-hot matmul (exact row pick, bf16) --------
    node_iota = lax.broadcasted_iota(jnp.int32, (n_pad, n_pad), 1)
    oh_ids = (node_iota == ids_ref[...]).astype(jnp.bfloat16)          # (N, N)
    x = jnp.dot(oh_ids, emb_ref[...],
                preferred_element_type=jnp.float32).astype(jnp.bfloat16)

    # ---- adjacency counts: A[t, s] = #edges s -> t (one-hot outer product) -
    src_iota = lax.broadcasted_iota(jnp.int32, (e_pad, n_pad), 1)
    oh_src = (src_iota == src_ref[...]).astype(jnp.bfloat16)           # (E, N)
    dst_iota = lax.broadcasted_iota(jnp.int32, (n_pad, e_pad), 0)
    oh_dst_t = (dst_iota == dst_ref[...]).astype(jnp.bfloat16)         # (N, E)
    a_cnt = jnp.dot(oh_dst_t, oh_src,
                    preferred_element_type=jnp.float32)                # (N, N)

    # ---- gcn_norm (add_self_loops=False): deg = in-degree over targets -----
    deg = jnp.sum(a_cnt, axis=1, keepdims=True)                        # (N, 1)
    dinv = jnp.where(deg > 0.0,
                     lax.rsqrt(jnp.maximum(deg, 1e-12)), 0.0)          # (N, 1)
    # A_hat @ z  ==  (D^-1/2 A) @ (D^-1/2 z): fold both scalings as row scalings
    a_left = (dinv * a_cnt).astype(jnp.bfloat16)                       # (N, N)

    def layer(h_bf16, idx, relu):
        w = w_ref[idx]                                                  # (F, F) bf16
        b = b_ref[idx]                                                  # (1, F) f32
        t = jnp.dot(h_bf16, w, preferred_element_type=jnp.float32)      # MXU, f32 acc
        t = (dinv * t).astype(jnp.bfloat16)                             # right D^-1/2
        h = jnp.dot(a_left, t, preferred_element_type=jnp.float32) + b  # MXU, f32 acc
        if relu:
            # downcast right after ReLU -> only one f32 accumulator live at a time
            h = jnp.maximum(h, 0.0).astype(jnp.bfloat16)
        return h

    h = layer(x, 0, relu=True)
    h = layer(h, 1, relu=True)
    h = layer(h, 2, relu=False)          # stays f32 for the output store

    o_ref[...] = h                        # (N_PAD, F_PAD) f32, lane-dense store


def gnn_forward(ids_pad, src_pad, dst_pad, emb_pad, w_pack, b_pack):
    """Single pallas_call; all operands are tiny and fully VMEM-resident."""
    n_pad, f_pad = emb_pad.shape
    e_pad = src_pad.shape[0]
    vmem = pl.BlockSpec(memory_space=pltpu.MemorySpace.VMEM)

    flops = 2 * (n_pad * n_pad * f_pad            # embedding gather matmul
                 + n_pad * e_pad * n_pad          # adjacency build matmul
                 + 3 * n_pad * f_pad * f_pad      # feature transforms
                 + 3 * n_pad * n_pad * f_pad)     # aggregations
    bytes_accessed = (ids_pad.size * 4 + src_pad.size * 4 + dst_pad.size * 4
                      + emb_pad.size * 2 + w_pack.size * 2 + b_pack.size * 4
                      + n_pad * f_pad * 4)        # f32 output

    return pl.pallas_call(
        gnn_kernel,
        out_shape=jax.ShapeDtypeStruct((n_pad, f_pad), jnp.float32),
        in_specs=[vmem] * 6,
        out_specs=vmem,
        cost_estimate=pl.CostEstimate(flops=flops,
                                      transcendentals=n_pad,
                                      bytes_accessed=bytes_accessed),
    )(ids_pad, src_pad, dst_pad, emb_pad, w_pack, b_pack)


# ----------------------------- parameter prep (runs ONCE) -------------------
def init_params(key, num_nodes, hidden_dim, output_dim):
    """Embedding ~ N(0,1); conv weights glorot-uniform; biases zero."""
    k_emb, k1, k2, k3 = jax.random.split(key, 4)

    def glorot(k, fan_in, fan_out):
        lim = jnp.sqrt(6.0 / (fan_in + fan_out))
        return jax.random.uniform(k, (fan_in, fan_out), jnp.float32, -lim, lim)

    return dict(
        embedding=jax.random.normal(k_emb, (num_nodes, hidden_dim), jnp.float32),
        w1=glorot(k1, hidden_dim, hidden_dim),
        b1=jnp.zeros((1, hidden_dim), jnp.float32),
        w2=glorot(k2, hidden_dim, hidden_dim),
        b2=jnp.zeros((1, hidden_dim), jnp.float32),
        w3=glorot(k3, hidden_dim, output_dim),
        b3=jnp.zeros((1, output_dim), jnp.float32),
    )


def prepare_params(params, n_pad=N_PAD, f_pad=F_PAD):
    """Pad + bf16-cast + stack parameters ONCE (hoisted out of the call path)."""
    emb = params["embedding"]
    assert emb.shape[0] <= n_pad and emb.shape[1] <= f_pad
    emb_pad = (jnp.zeros((n_pad, f_pad), jnp.bfloat16)
               .at[:emb.shape[0], :emb.shape[1]].set(emb.astype(jnp.bfloat16)))

    def pad_w(w):
        return (jnp.zeros((f_pad, f_pad), jnp.bfloat16)
                .at[:w.shape[0], :w.shape[1]].set(w.astype(jnp.bfloat16)))

    def pad_b(b):
        return jnp.zeros((1, f_pad), jnp.float32).at[:, :b.shape[1]].set(b)

    w_pack = jnp.stack([pad_w(params["w1"]), pad_w(params["w2"]),
                        pad_w(params["w3"])])                      # (3,128,128) bf16
    b_pack = jnp.stack([pad_b(params["b1"]), pad_b(params["b2"]),
                        pad_b(params["b3"])])                      # (3,1,128) f32
    return emb_pad, w_pack, b_pack


# ----------------------------- per-call JAX glue ----------------------------
@functools.partial(jax.jit, static_argnames=("output_dim",))
def gnn_model(emb_pad, w_pack, b_pack, node_ids, edge_index, output_dim):
    num_nodes = node_ids.shape[0]
    num_edges = edge_index.shape[1]
    e_pad = max(128, pl.cdiv(num_edges, 128) * 128)

    # Only tiny int32 padding remains in the per-call path (fill=-1 => no match
    # in the in-kernel one-hot compares, so padded rows/edges contribute zero).
    ids_pad = (jnp.full((N_PAD, 1), -1, jnp.int32)
               .at[:num_nodes, 0].set(node_ids.astype(jnp.int32)))
    src_pad = (jnp.full((e_pad, 1), -1, jnp.int32)
               .at[:num_edges, 0].set(edge_index[0].astype(jnp.int32)))
    dst_pad = (jnp.full((1, e_pad), -1, jnp.int32)
               .at[0, :num_edges].set(edge_index[1].astype(jnp.int32)))

    out_pad = gnn_forward(ids_pad, src_pad, dst_pad, emb_pad, w_pack, b_pack)
    return out_pad[:num_nodes, :output_dim]


# ----------------------------- references -----------------------------------
def build_normalized_adjacency(edge_index, num_nodes):
    """Dense GCN-normalized adjacency (no self loops), matching PyG gcn_norm."""
    row, col = edge_index[0], edge_index[1]
    ones = jnp.ones(row.shape[0], dtype=jnp.float32)
    deg = jnp.zeros((num_nodes,), jnp.float32).at[col].add(ones)
    deg_inv_sqrt = jnp.where(deg > 0, 1.0 / jnp.sqrt(jnp.maximum(deg, 1e-12)), 0.0)
    norm = deg_inv_sqrt[row] * deg_inv_sqrt[col]
    return jnp.zeros((num_nodes, num_nodes), jnp.float32).at[col, row].add(norm)


def gnn_reference_quantized(params, node_ids, edge_index, num_nodes):
    """Mirrors the kernel's bf16 casts / scaling order exactly (tight check)."""
    output_dim = params["w3"].shape[1]
    emb_bf = params["embedding"].astype(jnp.bfloat16).astype(jnp.float32)
    h = jnp.take(emb_bf, node_ids, axis=0)                           # == kernel gather

    row, col = edge_index[0], edge_index[1]
    a_cnt = (jnp.zeros((num_nodes, num_nodes), jnp.float32)
             .at[col, row].add(1.0))
    deg = jnp.sum(a_cnt, axis=1, keepdims=True)
    dinv = jnp.where(deg > 0.0, lax.rsqrt(jnp.maximum(deg, 1e-12)), 0.0)
    a_left = (dinv * a_cnt).astype(jnp.bfloat16).astype(jnp.float32)

    ws = [params["w1"], params["w2"], params["w3"]]
    bs = [params["b1"], params["b2"], params["b3"]]
    for i in range(3):
        w = ws[i].astype(jnp.bfloat16).astype(jnp.float32)
        h_bf = h.astype(jnp.bfloat16).astype(jnp.float32)
        t = h_bf @ w
        t = (dinv * t).astype(jnp.bfloat16).astype(jnp.float32)
        h = a_left @ t + bs[i]
        if i < 2:
            h = jnp.maximum(h, 0.0)
    return h[:, :output_dim]


def gnn_reference_f32(params, node_ids, edge_index, num_nodes):
    """Pure f32 reference = the original PyTorch-equivalent semantics."""
    x = jnp.take(params["embedding"], node_ids, axis=0)
    a = build_normalized_adjacency(edge_index, num_nodes)
    h = a @ (x @ params["w1"]) + params["b1"]
    h = jnp.maximum(h, 0.0)
    h = a @ (h @ params["w2"]) + params["b2"]
    h = jnp.maximum(h, 0.0)
    h = a @ (h @ params["w3"]) + params["b3"]
    return h


# ----------------------------- demo / checks --------------------------------
if __name__ == "__main__":
    num_nodes, hidden_dim, output_dim = 100, 32, 8

    key = jax.random.PRNGKey(0)
    params = init_params(key, num_nodes, hidden_dim, output_dim)
    # Padding / packing / bf16 cast of all parameters happens exactly once.
    emb_pad, w_pack, b_pack = prepare_params(params)

    node_ids = jnp.arange(num_nodes, dtype=jnp.int32)

    # Deterministic edge_index (2, E): bidirectional ring + a few long-range edges.
    src_ring = jnp.arange(num_nodes, dtype=jnp.int32)
    dst_ring = (src_ring + 1) % num_nodes
    extra_src = (jnp.arange(16, dtype=jnp.int32) * 3) % num_nodes
    extra_dst = (extra_src * 7 + 5) % num_nodes
    src = jnp.concatenate([src_ring, dst_ring, extra_src])
    dst = jnp.concatenate([dst_ring, src_ring, extra_dst])
    edge_index = jnp.stack([src, dst], axis=0)

    out = gnn_model(emb_pad, w_pack, b_pack, node_ids, edge_index, output_dim)
    out = jax.block_until_ready(out)
    assert out.shape == (num_nodes, output_dim)

    # Tight check against a reference that applies the same bf16 casts.
    ref_q = gnn_reference_quantized(params, node_ids, edge_index, num_nodes)
    assert jnp.allclose(out, ref_q, atol=2e-3, rtol=2e-3), \
        float(jnp.max(jnp.abs(out - ref_q)))

    # Loose check against the exact f32 (PyTorch-equivalent) semantics.
    ref_f32 = gnn_reference_f32(params, node_ids, edge_index, num_nodes)
    assert jnp.allclose(out, ref_f32, atol=7.5e-2, rtol=5e-2), \
        float(jnp.max(jnp.abs(out - ref_f32)))

    print("KERNEL_OK")
</pallas_src>

<mosaic_0001>
module attributes {stable_mosaic.version = 11 : i64} {
  func.func @gnn_kernel(%arg0: memref<128x1xi32, #tpu.memory_space<vmem>>, %arg1: memref<256x1xi32, #tpu.memory_space<vmem>>, %arg2: memref<1x256xi32, #tpu.memory_space<vmem>>, %arg3: memref<128x128xbf16, #tpu.memory_space<vmem>>, %arg4: memref<3x128x128xbf16, #tpu.memory_space<vmem>>, %arg5: memref<3x1x128xf32, #tpu.memory_space<vmem>>, %arg6: memref<128x128xf32, #tpu.memory_space<vmem>>) attributes {dimension_semantics = [], scalar_prefetch = 0 : i64, scratch_operands = 0 : i64, tpu.core_type = #tpu.core_type<tc>} {
    %0 = tpu.iota {dimensions = array<i32: 1>} : vector<128x128xi32>
    %c0 = arith.constant 0 : index
    %c0_0 = arith.constant 0 : index
    %1 = vector.load %arg0[%c0, %c0_0] : memref<128x1xi32, #tpu.memory_space<vmem>>, vector<128x1xi32>
    %2 = vector.broadcast %1 : vector<128x1xi32> to vector<128x128xi32>
    %3 = arith.cmpi eq, %0, %2 : vector<128x128xi32>
    %4 = arith.extui %3 : vector<128x128xi1> to vector<128x128xi32>
    %5 = arith.sitofp %4 : vector<128x128xi32> to vector<128x128xf32>
    %6 = arith.truncf %5 : vector<128x128xf32> to vector<128x128xbf16>
    %c0_1 = arith.constant 0 : index
    %c0_2 = arith.constant 0 : index
    %7 = vector.load %arg3[%c0_1, %c0_2] : memref<128x128xbf16, #tpu.memory_space<vmem>>, vector<128x128xbf16>
    %cst = arith.constant dense<0.000000e+00> : vector<128x128xf32>
    %8 = tpu.matmul %6, %7, %cst {dimension_numbers = #tpu.dot_dimension_numbers<[1], [0], [0], [1], [0, 0, 1, 1], [], []>} : vector<128x128xbf16>, vector<128x128xbf16>, vector<128x128xf32> -> vector<128x128xf32>
    %9 = arith.truncf %8 : vector<128x128xf32> to vector<128x128xbf16>
    %10 = tpu.iota {dimensions = array<i32: 1>} : vector<256x128xi32>
    %c0_3 = arith.constant 0 : index
    %c0_4 = arith.constant 0 : index
    %11 = vector.load %arg1[%c0_3, %c0_4] : memref<256x1xi32, #tpu.memory_space<vmem>>, vector<256x1xi32>
    %12 = vector.broadcast %11 : vector<256x1xi32> to vector<256x128xi32>
    %13 = arith.cmpi eq, %10, %12 : vector<256x128xi32>
    %14 = arith.extui %13 : vector<256x128xi1> to vector<256x128xi32>
    %15 = arith.sitofp %14 : vector<256x128xi32> to vector<256x128xf32>
    %16 = arith.truncf %15 : vector<256x128xf32> to vector<256x128xbf16>
    %17 = tpu.iota {dimensions = array<i32: 0>} : vector<128x256xi32>
    %c0_5 = arith.constant 0 : index
    %c0_6 = arith.constant 0 : index
    %18 = vector.load %arg2[%c0_5, %c0_6] : memref<1x256xi32, #tpu.memory_space<vmem>>, vector<1x256xi32>
    %19 = vector.broadcast %18 : vector<1x256xi32> to vector<128x256xi32>
    %20 = arith.cmpi eq, %17, %19 : vector<128x256xi32>
    %21 = arith.extui %20 : vector<128x256xi1> to vector<128x256xi32>
    %22 = arith.sitofp %21 : vector<128x256xi32> to vector<128x256xf32>
    %23 = arith.truncf %22 : vector<128x256xf32> to vector<128x256xbf16>
    %cst_7 = arith.constant dense<0.000000e+00> : vector<128x128xf32>
    %24 = tpu.matmul %23, %16, %cst_7 {dimension_numbers = #tpu.dot_dimension_numbers<[1], [0], [0], [1], [0, 0, 1, 1], [], []>} : vector<128x256xbf16>, vector<256x128xbf16>, vector<128x128xf32> -> vector<128x128xf32>
    %cst_8 = arith.constant dense<0.000000e+00> : vector<128xf32>
    %25 = vector.multi_reduction <add>, %24, %cst_8 [1] : vector<128x128xf32> to vector<128xf32>
    %26 = vector.shape_cast %25 : vector<128xf32> to vector<128x1xf32>
    %cst_9 = arith.constant 0.000000e+00 : f32
    %27 = vector.broadcast %cst_9 : f32 to vector<128x1xf32>
    %28 = arith.cmpf ogt, %26, %27 : vector<128x1xf32>
    %cst_10 = arith.constant 9.99999996E-13 : f32
    %29 = vector.broadcast %cst_10 : f32 to vector<128x1xf32>
    %30 = arith.maximumf %26, %29 : vector<128x1xf32>
    %31 = math.rsqrt %30 : vector<128x1xf32>
    %cst_11 = arith.constant 0.000000e+00 : f32
    %32 = vector.broadcast %cst_11 : f32 to vector<128x1xf32>
    %33 = arith.select %28, %31, %32 : vector<128x1xi1>, vector<128x1xf32>
    %34 = vector.broadcast %33 : vector<128x1xf32> to vector<128x128xf32>
    %35 = arith.mulf %34, %24 : vector<128x128xf32>
    %36 = arith.truncf %35 : vector<128x128xf32> to vector<128x128xbf16>
    %c0_12 = arith.constant 0 : index
    %c0_13 = arith.constant 0 : index
    %c0_14 = arith.constant 0 : index
    %37 = vector.load %arg4[%c0_12, %c0_13, %c0_14] : memref<3x128x128xbf16, #tpu.memory_space<vmem>>, vector<1x128x128xbf16>
    %38 = vector.shape_cast %37 : vector<1x128x128xbf16> to vector<128x128xbf16>
    %c0_15 = arith.constant 0 : index
    %c0_16 = arith.constant 0 : index
    %c0_17 = arith.constant 0 : index
    %39 = vector.load %arg5[%c0_15, %c0_16, %c0_17] : memref<3x1x128xf32, #tpu.memory_space<vmem>>, vector<1x1x128xf32>
    %40 = vector.shape_cast %39 : vector<1x1x128xf32> to vector<1x128xf32>
    %cst_18 = arith.constant dense<0.000000e+00> : vector<128x128xf32>
    %41 = tpu.matmul %9, %38, %cst_18 {dimension_numbers = #tpu.dot_dimension_numbers<[1], [0], [0], [1], [0, 0, 1, 1], [], []>} : vector<128x128xbf16>, vector<128x128xbf16>, vector<128x128xf32> -> vector<128x128xf32>
    %42 = vector.broadcast %33 : vector<128x1xf32> to vector<128x128xf32>
    %43 = arith.mulf %42, %41 : vector<128x128xf32>
    %44 = arith.truncf %43 : vector<128x128xf32> to vector<128x128xbf16>
    %cst_19 = arith.constant dense<0.000000e+00> : vector<128x128xf32>
    %45 = tpu.matmul %36, %44, %cst_19 {dimension_numbers = #tpu.dot_dimension_numbers<[1], [0], [0], [1], [0, 0, 1, 1], [], []>} : vector<128x128xbf16>, vector<128x128xbf16>, vector<128x128xf32> -> vector<128x128xf32>
    %46 = vector.broadcast %40 : vector<1x128xf32> to vector<128x128xf32>
    %47 = arith.addf %45, %46 : vector<128x128xf32>
    %cst_20 = arith.constant 0.000000e+00 : f32
    %48 = vector.broadcast %cst_20 : f32 to vector<128x128xf32>
    %49 = arith.maximumf %47, %48 : vector<128x128xf32>
    %50 = arith.truncf %49 : vector<128x128xf32> to vector<128x128xbf16>
    %c1 = arith.constant 1 : index
    %c0_21 = arith.constant 0 : index
    %c0_22 = arith.constant 0 : index
    %51 = vector.load %arg4[%c1, %c0_21, %c0_22] : memref<3x128x128xbf16, #tpu.memory_space<vmem>>, vector<1x128x128xbf16>
    %52 = vector.shape_cast %51 : vector<1x128x128xbf16> to vector<128x128xbf16>
    %c1_23 = arith.constant 1 : index
    %c0_24 = arith.constant 0 : index
    %c0_25 = arith.constant 0 : index
    %53 = vector.load %arg5[%c1_23, %c0_24, %c0_25] : memref<3x1x128xf32, #tpu.memory_space<vmem>>, vector<1x1x128xf32>
    %54 = vector.shape_cast %53 : vector<1x1x128xf32> to vector<1x128xf32>
    %cst_26 = arith.constant dense<0.000000e+00> : vector<128x128xf32>
    %55 = tpu.matmul %50, %52, %cst_26 {dimension_numbers = #tpu.dot_dimension_numbers<[1], [0], [0], [1], [0, 0, 1, 1], [], []>} : vector<128x128xbf16>, vector<128x128xbf16>, vector<128x128xf32> -> vector<128x128xf32>
    %56 = vector.broadcast %33 : vector<128x1xf32> to vector<128x128xf32>
    %57 = arith.mulf %56, %55 : vector<128x128xf32>
    %58 = arith.truncf %57 : vector<128x128xf32> to vector<128x128xbf16>
    %cst_27 = arith.constant dense<0.000000e+00> : vector<128x128xf32>
    %59 = tpu.matmul %36, %58, %cst_27 {dimension_numbers = #tpu.dot_dimension_numbers<[1], [0], [0], [1], [0, 0, 1, 1], [], []>} : vector<128x128xbf16>, vector<128x128xbf16>, vector<128x128xf32> -> vector<128x128xf32>
    %60 = vector.broadcast %54 : vector<1x128xf32> to vector<128x128xf32>
    %61 = arith.addf %59, %60 : vector<128x128xf32>
    %cst_28 = arith.constant 0.000000e+00 : f32
    %62 = vector.broadcast %cst_28 : f32 to vector<128x128xf32>
    %63 = arith.maximumf %61, %62 : vector<128x128xf32>
    %64 = arith.truncf %63 : vector<128x128xf32> to vector<128x128xbf16>
    %c2 = arith.constant 2 : index
    %c0_29 = arith.constant 0 : index
    %c0_30 = arith.constant 0 : index
    %65 = vector.load %arg4[%c2, %c0_29, %c0_30] : memref<3x128x128xbf16, #tpu.memory_space<vmem>>, vector<1x128x128xbf16>
    %66 = vector.shape_cast %65 : vector<1x128x128xbf16> to vector<128x128xbf16>
    %c2_31 = arith.constant 2 : index
    %c0_32 = arith.constant 0 : index
    %c0_33 = arith.constant 0 : index
    %67 = vector.load %arg5[%c2_31, %c0_32, %c0_33] : memref<3x1x128xf32, #tpu.memory_space<vmem>>, vector<1x1x128xf32>
    %68 = vector.shape_cast %67 : vector<1x1x128xf32> to vector<1x128xf32>
    %cst_34 = arith.constant dense<0.000000e+00> : vector<128x128xf32>
    %69 = tpu.matmul %64, %66, %cst_34 {dimension_numbers = #tpu.dot_dimension_numbers<[1], [0], [0], [1], [0, 0, 1, 1], [], []>} : vector<128x128xbf16>, vector<128x128xbf16>, vector<128x128xf32> -> vector<128x128xf32>
    %70 = vector.broadcast %33 : vector<128x1xf32> to vector<128x128xf32>
    %71 = arith.mulf %70, %69 : vector<128x128xf32>
    %72 = arith.truncf %71 : vector<128x128xf32> to vector<128x128xbf16>
    %cst_35 = arith.constant dense<0.000000e+00> : vector<128x128xf32>
    %73 = tpu.matmul %36, %72, %cst_35 {dimension_numbers = #tpu.dot_dimension_numbers<[1], [0], [0], [1], [0, 0, 1, 1], [], []>} : vector<128x128xbf16>, vector<128x128xbf16>, vector<128x128xf32> -> vector<128x128xf32>
    %74 = vector.broadcast %68 : vector<1x128xf32> to vector<128x128xf32>
    %75 = arith.addf %73, %74 : vector<128x128xf32>
    %c0_36 = arith.constant 0 : index
    %c0_37 = arith.constant 0 : index
    %76 = vector.load %arg6[%c0_36, %c0_37] : memref<128x128xf32, #tpu.memory_space<vmem>>, vector<128x128xf32>
    tpu.vector_store %arg6[%c0_36, %c0_37], %75 {strides = array<i32>} : memref<128x128xf32, #tpu.memory_space<vmem>>, vector<128x128xf32>,
    return
  }
}

</mosaic_0001>

<bundles_post_ra>
// kernel: gnn_model.1
= control target key start
LH: loop header
LB: loop body
LE: loop exit
PB: predicated region body
PF: predicated region fallthrough
CT: control target
= control target key end

     0   :  { %v2562_v0 = vmov 0   ;;  %v24_v55 = vlaneseq  ;;  %s3378_s0 = inlined_call_operand.vmem [shape: s32[128,1], index: 0, kind: input, shape index: {}]   ;;  %s3379_s3 = inlined_call_operand.vmem [shape: bf16[128,128], index: 3, kind: input, shape index: {}]   ;;  %s3380_s1 = inlined_call_operand.vmem [shape: s32[256,1], index: 1, kind: input, shape index: {}]   ;;  %s3381_s2 = inlined_call_operand.vmem [shape: s32[1,256], index: 2, kind: input, shape index: {}]   ;;  %s3382_s4 = inlined_call_operand.vmem [shape: bf16[3,128,128], index: 4, kind: input, shape index: {}]   ;;  %s3383_s5 = inlined_call_operand.vmem [shape: f32[3,1,128], index: 5, kind: input, shape index: {}]   ;;  %s3384_s6 = inlined_call_operand.vmem [shape: f32[128,128], index: 6, kind: output, shape index: {}]  }
   0x1   :  { %2497 = vset.pattern.permute.xlu1 %v2562_v0  ;;  %2496 = vset.pattern.permute.xlu0 %v2562_v0  ;;  %v28_v1 = vld [vmem:[%s3378_s0 + $0x10] sm:$0xff]  ;;  %v26_v2 = vld [vmem:[%s3378_s0] sm:$0xff]  ;;  %v29_v3 = vld [vmem:[%s3378_s0 + $0x18] sm:$0xff] }
   0x2   :  { %49 = vperm.xlu1 %2497, %v28_v1   ;;  %43 = vperm.xlu0 %2496, %v26_v2   ;;  %v27_v4 = vld [vmem:[%s3378_s0 + $0x8] sm:$0xff]  ;;  %v30_v6 = vld [vmem:[%s3378_s0 + $0x20] sm:$0xff]  ;;  %v33_v7 = vld [vmem:[%s3378_s0 + $0x38] sm:$0xff]  ;;  %v2767_v58 = vshrl.u32 %v24_v55, 7  ;;  %v2563_v1 = vmov 1.0|1.0  }
   0x3   :  { %v31_v5 = vld [vmem:[%s3378_s0 + $0x28] sm:$0xff]  ;;  %v32_v8 = vld [vmem:[%s3378_s0 + $0x30] sm:$0xff]  ;;  %v34_v10 = vld [vmem:[%s3378_s0 + $0x40] sm:$0xff] }
   0x4   :  { %v35_v9 = vld [vmem:[%s3378_s0 + $0x48] sm:$0xff]  ;;  %v37_v11 = vld [vmem:[%s3378_s0 + $0x58] sm:$0xff]  ;;  %v2498_v12 = vld [vmem:[%s3379_s3] sm:$0xff]   ;;  %v579_v59 = vsub.s32 1, %v2767_v58  ;;  %v575_v61 = vsub.s32 0, %v2767_v58  ;;  %v557_v62 = vadd.s32 8, %v2767_v58 }
   0x5   :  { %v2499_v13 = vld [vmem:[%s3379_s3 + $0x8] sm:$0xff]   ;;  %v36_v14 = vld [vmem:[%s3378_s0 + $0x50] sm:$0xff]  ;;  %2254 = vmatprep.subr.bf16.mxu0 %v2498_v12  ;;  %v38_v17 = vld [vmem:[%s3378_s0 + $0x60] sm:$0xff] }
   0x6   :  { %52 = vperm.xlu1 %2497, %v29_v3   ;;  %46 = vperm.xlu0 %2496, %v27_v4   ;;  %v2500_v15 = vld [vmem:[%s3379_s3 + $0x10] sm:$0xff]   ;;  %v39_v16 = vld [vmem:[%s3378_s0 + $0x68] sm:$0xff]  ;;  %v2501_v18 = vld [vmem:[%s3379_s3 + $0x18] sm:$0xff]   ;;  %v558_v3 = vadd.s32 16, %v2767_v58  ;;  %v559_v4 = vadd.s32 24, %v2767_v58 }
   0x7   :  { %2255 = vmatpush3.bf16.msra.mxu0 %v2498_v12  ;;  %v41_v19 = vld [vmem:[%s3378_s0 + $0x78] sm:$0xff]  ;;  %v40_v20 = vld [vmem:[%s3378_s0 + $0x70] sm:$0xff]  ;;  %v2502_v21 = vld [vmem:[%s3379_s3 + $0x20] sm:$0xff]   ;;  %v563_v12 = vadd.s32 56, %v2767_v58 }
   0x8   :  { %2256 = vmatprep.subr.bf16.mxu0 %v2499_v13  ;;  %v332_v22 = vld [vmem:[%s3380_s1 + $0x88] sm:$0xff]  ;;  %v331_v23 = vld [vmem:[%s3380_s1 + $0x80] sm:$0xff]  ;;  %v2504_v27 = vld [vmem:[%s3379_s3 + $0x30] sm:$0xff]  }
   0x9   :  { %v2503_v24 = vld [vmem:[%s3379_s3 + $0x28] sm:$0xff]   ;;  %v315_v26 = vld [vmem:[%s3380_s1] sm:$0xff]  ;;  %v334_v28 = vld [vmem:[%s3380_s1 + $0x98] sm:$0xff] }
   0xa   :  { %58 = vperm.xlu1 %2497, %v31_v5   ;;  %55 = vperm.xlu0 %2496, %v30_v6   ;;  %v316_v25 = vld [vmem:[%s3380_s1 + $0x8] sm:$0xff]  ;;  %v333_v29 = vld [vmem:[%s3380_s1 + $0x90] sm:$0xff]  ;;  %v2505_v30 = vld [vmem:[%s3379_s3 + $0x38] sm:$0xff]  }
   0xb   :  { %2257 = vmatpush3.bf16.msra.mxu0 %v2499_v13  ;;  %v318_v31 = vld [vmem:[%s3380_s1 + $0x18] sm:$0xff]  ;;  %v317_v32 = vld [vmem:[%s3380_s1 + $0x10] sm:$0xff]  ;;  %v336_v33 = vld [vmem:[%s3380_s1 + $0xa8] sm:$0xff]  ;;  %v3395_v13 = vmov 0 }
   0xc   :  { %2258 = vmatprep.subr.bf16.mxu0 %v2500_v15  ;;  %v335_v34 = vld [vmem:[%s3380_s1 + $0xa0] sm:$0xff]  ;;  %v320_v35 = vld [vmem:[%s3380_s1 + $0x28] sm:$0xff]  ;;  %v338_v37 = vld [vmem:[%s3380_s1 + $0xb8] sm:$0xff] }
   0xd   :  { %v319_v36 = vld [vmem:[%s3380_s1 + $0x20] sm:$0xff]  ;;  %v337_v38 = vld [vmem:[%s3380_s1 + $0xb0] sm:$0xff]  ;;  %v322_v39 = vld [vmem:[%s3380_s1 + $0x38] sm:$0xff] }
   0xe   :  { %64 = vperm.xlu1 %2497, %v33_v7   ;;  %61 = vperm.xlu0 %2496, %v32_v8   ;;  %v321_v40 = vld [vmem:[%s3380_s1 + $0x30] sm:$0xff]  ;;  %v340_v41 = vld [vmem:[%s3380_s1 + $0xc8] sm:$0xff]  ;;  %v339_v42 = vld [vmem:[%s3380_s1 + $0xc0] sm:$0xff]  ;;  %v560_v7 = vadd.s32 32, %v2767_v58  ;;  %v561_v8 = vadd.s32 40, %v2767_v58 }
   0xf   :  { %2259 = vmatpush3.bf16.msra.mxu0 %v2500_v15  ;;  %v324_v43 = vld [vmem:[%s3380_s1 + $0x48] sm:$0xff]  ;;  %v323_v44 = vld [vmem:[%s3380_s1 + $0x40] sm:$0xff]  ;;  %v342_v45 = vld [vmem:[%s3380_s1 + $0xd8] sm:$0xff]  ;;  %v564_v15 = vadd.s32 64, %v2767_v58 }
  0x10   :  { %2260 = vmatprep.subr.bf16.mxu0 %v2501_v18  ;;  %v341_v46 = vld [vmem:[%s3380_s1 + $0xd0] sm:$0xff]  ;;  %v326_v47 = vld [vmem:[%s3380_s1 + $0x58] sm:$0xff]  ;;  %v344_v49 = vld [vmem:[%s3380_s1 + $0xe8] sm:$0xff] }
  0x11   :  { %v325_v48 = vld [vmem:[%s3380_s1 + $0x50] sm:$0xff]  ;;  %v343_v50 = vld [vmem:[%s3380_s1 + $0xe0] sm:$0xff]  ;;  %v328_v51 = vld [vmem:[%s3380_s1 + $0x68] sm:$0xff] }
  0x12   :  { %70 = vperm.xlu1 %2497, %v35_v9   ;;  %67 = vperm.xlu0 %2496, %v34_v10   ;;  %v327_v52 = vld [vmem:[%s3380_s1 + $0x60] sm:$0xff]  ;;  %v346_v53 = vld [vmem:[%s3380_s1 + $0xf8] sm:$0xff]  ;;  %v345_v54 = vld [vmem:[%s3380_s1 + $0xf0] sm:$0xff]  ;;  %v3391_v9 = vmov 0  ;;  %v3393_v10 = vmov 0 }
  0x13   :  { %2261 = vmatpush3.bf16.msra.mxu0 %v2501_v18  ;;  %v330_v56 = vld [vmem:[%s3380_s1 + $0x78] sm:$0xff]  ;;  %v329_v57 = vld [vmem:[%s3380_s1 + $0x70] sm:$0xff]  ;;  %v572_v60 = vld [vmem:[%s3381_s2] sm:$0x3]  ;;  %v3401_v18 = vmov 0 }
  0x14   :  { %2262 = vmatprep.subr.bf16.mxu0 %v2502_v21  ;;  %v2775_v63 = vrot.slane %v572_v60, %v579_v59  ;;  %v2777_v0 = vrot.slane %v572_v60, %v575_v61  ;;  %v2511_v59 = vld [vmem:[%s3382_s4 + $0x28] sm:$0xff]  }
  0x16   :  { %76 = vperm.xlu1 %2497, %v37_v11   ;;  %73 = vperm.xlu0 %2496, %v36_v14   ;;  %vm582_vm0 = vcmp.eq.s32.totalorder %v2767_v58, %v2775_v63  ;;  %vm584_vm1 = vcmp.eq.s32.totalorder %v557_v62, %v2775_v63  ;;  %vm581_vm3 = vcmp.eq.s32.totalorder %v2767_v58, %v2777_v0  ;;  %v562_v11 = vadd.s32 48, %v2767_v58 }
  0x17   :  { %2263 = vmatpush3.bf16.msra.mxu0 %v2502_v21  ;;  %vm1985_vm2 = vmpackc.low %vm584_vm1, %vm582_vm0  ;;  %vm583_vm4 = vcmp.eq.s32.totalorder %v557_v62, %v2777_v0  ;;  %vm586_vm6 = vcmp.eq.s32.totalorder %v558_v3, %v2775_v63  ;;  %vm588_vm7 = vcmp.eq.s32.totalorder %v559_v4, %v2775_v63  ;;  %vm585_vm8 = vcmp.eq.s32.totalorder %v558_v3, %v2777_v0  ;;  %v2512_v62 = vld [vmem:[%s3382_s4 + $0x30] sm:$0xff]  }
  0x18   :  { %2264 = vmatprep.subr.bf16.mxu0 %v2503_v24  ;;  %1986 = vmatprep.mubr.msk.bf16.mxu1 %vm1985_vm2, %v2563_v1  ;;  %vm2786_vm5 = vmpackc.low %vm583_vm4, %vm581_vm3  ;;  %vm587_vm9 = vcmp.eq.s32.totalorder %v559_v4, %v2777_v0  ;;  %vm590_vm12 = vcmp.eq.s32.totalorder %v560_v7, %v2775_v63  ;;  %vm592_vm13 = vcmp.eq.s32.totalorder %v561_v8, %v2775_v63  ;;  %v3397_v14 = vmov 0 }
  0x19   :  { %vm2796_vm10 = vmpackc.low %vm588_vm7, %vm586_vm6  ;;  %vm589_vm14 = vcmp.eq.s32.totalorder %v560_v7, %v2777_v0  ;;  %vm591_vm15 = vcmp.eq.s32.totalorder %v561_v8, %v2777_v0  ;;  %vm594_vm2 = vcmp.eq.s32.totalorder %v562_v11, %v2775_v63  ;;  %vm596_vm3 = vcmp.eq.s32.totalorder %v563_v12, %v2775_v63 }
  0x1a   :  { %82 = vperm.xlu1 %2497, %v39_v16   ;;  %79 = vperm.xlu0 %2496, %v38_v17   ;;  %vm2800_vm11 = vmpackc.low %vm587_vm9, %vm585_vm8  ;;  %vm593_vm4 = vcmp.eq.s32.totalorder %v562_v11, %v2777_v0  ;;  %vm595_vm6 = vcmp.eq.s32.totalorder %v563_v12, %v2777_v0  ;;  %v565_v16 = vadd.s32 72, %v2767_v58  ;;  %vm598_vm9 = vcmp.eq.s32.totalorder %v564_v15, %v2775_v63 }
  0x1b   :  { %2265 = vmatpush3.bf16.msra.mxu0 %v2503_v24  ;;  %vm2810_vm0 = vmpackc.low %vm592_vm13, %vm590_vm12  ;;  %vm597_vm13 = vcmp.eq.s32.totalorder %v564_v15, %v2777_v0  ;;  %v3399_v17 = vmov 0  ;;  %v2846_v21 = vand.u32 127, %v24_v55 }
  0x1c   :  { %2266 = vmatprep.subr.bf16.mxu0 %v2504_v27  ;;  %v3392_v9 = vsel %vm2810_vm0, 4294967295, %v3391_v9  ;;  %vm2814_vm1 = vmpackc.low %vm591_vm15, %vm589_vm14  ;;  %vm600_vm12 = vcmp.eq.s32.totalorder %v565_v16, %v2775_v63  ;;  %vm599_vm14 = vcmp.eq.s32.totalorder %v565_v16, %v2777_v0 }
  0x1d   :  { %v3394_v10 = vsel %vm2814_vm1, 4294967295, %v3393_v10  ;;  %vm2824_vm7 = vmpackc.low %vm596_vm3, %vm594_vm2 }
  0x1e   :  { %88 = vperm.xlu1 %2497, %v41_v19   ;;  %85 = vperm.xlu0 %2496, %v40_v20   ;;  %v3396_v13 = vsel %vm2824_vm7, 4294967295, %v3395_v13  ;;  %vm2828_vm8 = vmpackc.low %vm595_vm6, %vm593_vm4 }
  0x1f   :  { %2267 = vmatpush3.bf16.msra.mxu0 %v2504_v27  ;;  %v3398_v14 = vsel %vm2828_vm8, 4294967295, %v3397_v14  ;;  %vm2838_vm15 = vmpackc.low %vm600_vm12, %vm598_vm9 }
  0x20   :  { %2268 = vmatprep.subr.bf16.mxu0 %v2505_v30  ;;  %v3400_v17 = vsel %vm2838_vm15, 4294967295, %v3399_v17  ;;  %vm2842_vm2 = vmpackc.low %vm599_vm14, %vm597_vm13 }
  0x21   :  { %v3402_v18 = vsel %vm2842_vm2, 4294967295, %v3401_v18 }
  0x22   :  { %399 = vperm.xlu1 %2497, %v332_v22   ;;  %396 = vperm.xlu0 %2496, %v331_v23   ;;  %v566_v22 = vadd.s32 80, %v2767_v58  ;;  %v567_v23 = vadd.s32 88, %v2767_v58 }
  0x23   :  { %2269 = vmatpush3.bf16.msra.mxu0 %v2505_v30  ;;  %v568_v30 = vadd.s32 96, %v2767_v58 }
  0x24   :  { %vm602_vm3 = vcmp.eq.s32.totalorder %v566_v22, %v2775_v63  ;;  %vm604_vm4 = vcmp.eq.s32.totalorder %v567_v23, %v2775_v63  ;;  %vm601_vm6 = vcmp.eq.s32.totalorder %v566_v22, %v2777_v0  ;;  %vm603_vm9 = vcmp.eq.s32.totalorder %v567_v23, %v2777_v0 }
  0x25   :  { %vm2857_vm2 = vmpackc.low %vm604_vm4, %vm602_vm3 }
  0x26   :  { %351 = vperm.xlu1 %2497, %v316_v25   ;;  %348 = vperm.xlu0 %2496, %v315_v26   ;;  %vm2863_vm1 = vmpackc.low %vm603_vm9, %vm601_vm6  ;;  %vm605_vm6 = vcmp.eq.s32.totalorder %v568_v30, %v2777_v0 }
  0x2a   :  { %405 = vperm.xlu1 %2497, %v334_v28   ;;  %402 = vperm.xlu0 %2496, %v333_v29   ;;  %v3405_v29 = vmov 0 }
  0x2b   :  { %v3406_v29 = vsel %vm2863_vm1, 4294967295, %v3405_v29 }
  0x2e   :  { %357 = vperm.xlu1 %2497, %v318_v31   ;;  %354 = vperm.xlu0 %2496, %v317_v32   ;;  %v569_v31 = vadd.s32 104, %v2767_v58 }
  0x30   :  { %vm607_vm9 = vcmp.eq.s32.totalorder %v569_v31, %v2777_v0 }
  0x32   :  { %411 = vperm.xlu1 %2497, %v336_v33   ;;  %408 = vperm.xlu0 %2496, %v335_v34   ;;  %v3407_v34 = vmov 0 }
  0x36   :  { %363 = vperm.xlu1 %2497, %v320_v35   ;;  %360 = vperm.xlu0 %2496, %v319_v36   ;;  %v3409_v35 = vmov 0 }
  0x3a   :  { %417 = vperm.xlu1 %2497, %v338_v37   ;;  %414 = vperm.xlu0 %2496, %v337_v38   ;;  %v570_v38 = vadd.s32 112, %v2767_v58 }
  0x3e   :  { %369 = vperm.xlu1 %2497, %v322_v39   ;;  %366 = vperm.xlu0 %2496, %v321_v40   ;;  %v571_v39 = vadd.s32 120, %v2767_v58 }
  0x42   :  { %423 = vperm.xlu1 %2497, %v340_v41   ;;  %420 = vperm.xlu0 %2496, %v339_v42  }
  0x46   :  { %375 = vperm.xlu1 %2497, %v324_v43   ;;  %372 = vperm.xlu0 %2496, %v323_v44  }
  0x4a   :  { %429 = vperm.xlu1 %2497, %v342_v45   ;;  %426 = vperm.xlu0 %2496, %v341_v46   ;;  %v2506_v46 = vld [vmem:[%s3382_s4] sm:$0xff]  }
  0x4b   :  { %2286 = vmatprep.subr.bf16.mxu0 %v2506_v46 }
  0x4e   :  { %381 = vperm.xlu1 %2497, %v326_v47   ;;  %378 = vperm.xlu0 %2496, %v325_v48  }
  0x52   :  { %435 = vperm.xlu1 %2497, %v344_v49   ;;  %432 = vperm.xlu0 %2496, %v343_v50   ;;  %v2507_v49 = vld [vmem:[%s3382_s4 + $0x8] sm:$0xff]   ;;  %v2508_v50 = vld [vmem:[%s3382_s4 + $0x10] sm:$0xff]  }
  0x56   :  { %387 = vperm.xlu1 %2497, %v328_v51   ;;  %384 = vperm.xlu0 %2496, %v327_v52  }
  0x5a   :  { %441 = vperm.xlu1 %2497, %v346_v53   ;;  %438 = vperm.xlu0 %2496, %v345_v54   ;;  %v2509_v53 = vld [vmem:[%s3382_s4 + $0x18] sm:$0xff]  }
  0x5e   :  { %393 = vperm.xlu1 %2497, %v330_v56   ;;  %390 = vperm.xlu0 %2496, %v329_v57   ;;  %v2510_v56 = vld [vmem:[%s3382_s4 + $0x20] sm:$0xff]  }
  0x81   :  { %v50_v19 = vpop.permute.xlu1 %49  ;;  %v44_v20 = vpop.permute.xlu0 %43 }
  0x82   :  { %vm92_vm12 = vcmp.eq.s32.totalorder %v2846_v21, %v50_v19  ;;  %vm90_vm15 = vcmp.eq.s32.totalorder %v2846_v21, %v44_v20 }
  0x85   :  { %v53_v24 = vpop.permute.xlu1 %52  ;;  %v47_v25 = vpop.permute.xlu0 %46 }
  0x86   :  { %vm93_vm13 = vcmp.eq.s32.totalorder %v2846_v21, %v53_v24  ;;  %vm91_vm14 = vcmp.eq.s32.totalorder %v2846_v21, %v47_v25 }
  0x87   :  { %vm1875_vm8 = vmpackc.low %vm93_vm13, %vm92_vm12 }
  0x88   :  { %vm1873_vm7 = vmpackc.low %vm91_vm14, %vm90_vm15  ;;  %vm608_vm15 = vcmp.eq.s32.totalorder %v569_v31, %v2775_v63 }
  0x89   :  { %2270 = vmatprep.mubr.msk.bf16.mxu0 %vm1873_vm7, %v2563_v1  ;;  %v59_v27 = vpop.permute.xlu1 %58  ;;  %v56_v28 = vpop.permute.xlu0 %55  ;;  %vm606_vm7 = vcmp.eq.s32.totalorder %v568_v30, %v2775_v63  ;;  %vm2883_vm14 = vmpackc.low %vm607_vm9, %vm605_vm6  ;;  %vm609_vm6 = vcmp.eq.s32.totalorder %v570_v38, %v2777_v0  ;;  %vm611_vm9 = vcmp.eq.s32.totalorder %v571_v39, %v2777_v0 }
  0x8a   :  { %vm95_vm0 = vcmp.eq.s32.totalorder %v2846_v21, %v59_v27  ;;  %2271 = vmatmul.mubr.msk.bf16.vlgmr.msra.gmra.mrb[0].mxu0 %vm1875_vm8, %v2563_v1  ;;  %vm94_vm3 = vcmp.eq.s32.totalorder %v2846_v21, %v56_v28  ;;  %vm2879_vm12 = vmpackc.low %vm608_vm15, %vm606_vm7  ;;  %v3410_v35 = vsel %vm2883_vm14, 4294967295, %v3409_v35  ;;  %vm610_vm7 = vcmp.eq.s32.totalorder %v570_v38, %v2775_v63  ;;  %v2513_v38 = vld [vmem:[%s3382_s4 + $0x38] sm:$0xff]  }
  0x8b   :  { %vm1877_vm4 = vmpackc.low %vm95_vm0, %vm94_vm3  ;;  %v3408_v34 = vsel %vm2879_vm12, 4294967295, %v3407_v34  ;;  %vm612_vm15 = vcmp.eq.s32.totalorder %v571_v39, %v2775_v63  ;;  %2287 = vmatpush3.bf16.msra.mxu0 %v2506_v46 }
  0x8c   :  { %2274 = vmatprep.mubr.msk.bf16.mxu0 %vm1877_vm4, %v2563_v1  ;;  %2288 = vmatprep.subr.bf16.mxu0 %v2507_v49 }
  0x8d   :  { %v65_v32 = vpop.permute.xlu1 %64  ;;  %v62_v33 = vpop.permute.xlu0 %61 }
  0x8e   :  { %vm97_vm8 = vcmp.eq.s32.totalorder %v2846_v21, %v65_v32  ;;  %vm96_vm0 = vcmp.eq.s32.totalorder %v2846_v21, %v62_v33 }
  0x8f   :  { %vm1879_vm13 = vmpackc.low %vm97_vm8, %vm96_vm0  ;;  %2289 = vmatpush3.bf16.msra.mxu0 %v2507_v49 }
  0x90   :  { %2290 = vmatprep.subr.bf16.mxu0 %v2508_v50 }
  0x91   :  { %v71_v36 = vpop.permute.xlu1 %70  ;;  %v68_v37 = vpop.permute.xlu0 %67 }
  0x92   :  { %vm99_vm3 = vcmp.eq.s32.totalorder %v2846_v21, %v71_v36  ;;  %2275 = vmatmul.mubr.msk.bf16.gmra.mrb[4].mxu0 %vm1879_vm13, %v2563_v1  ;;  %vm98_vm4 = vcmp.eq.s32.totalorder %v2846_v21, %v68_v37  ;;  %vm2899_vm13 = vmpackc.low %vm612_vm15, %vm610_vm7 }
  0x93   :  { %vm1881_vm1 = vmpackc.low %vm99_vm3, %vm98_vm4  ;;  %2291 = vmatpush3.bf16.msra.mxu0 %v2508_v50 }
  0x94   :  { %2278 = vmatprep.mubr.msk.bf16.mxu0 %vm1881_vm1, %v2563_v1  ;;  %vm2903_vm1 = vmpackc.low %vm611_vm9, %vm609_vm6  ;;  %2292 = vmatprep.subr.bf16.mxu0 %v2509_v53 }
  0x95   :  { %v77_v40 = vpop.permute.xlu1 %76  ;;  %v74_v41 = vpop.permute.xlu0 %73 }
  0x96   :  { %vm101_vm8 = vcmp.eq.s32.totalorder %v2846_v21, %v77_v40  ;;  %vm100_vm0 = vcmp.eq.s32.totalorder %v2846_v21, %v74_v41 }
  0x97   :  { %vm1883_vm3 = vmpackc.low %vm101_vm8, %vm100_vm0  ;;  %2293 = vmatpush3.bf16.msra.mxu0 %v2509_v53 }
  0x98   :  { %2294 = vmatprep.subr.bf16.mxu0 %v2510_v56 }
  0x99   :  { %v83_v44 = vpop.permute.xlu1 %82  ;;  %v80_v45 = vpop.permute.xlu0 %79 }
  0x9a   :  { %vm103_vm4 = vcmp.eq.s32.totalorder %v2846_v21, %v83_v44  ;;  %2279 = vmatmul.mubr.msk.bf16.gmra.mrb[8].mxu0 %vm1883_vm3, %v2563_v1  ;;  %vm102_vm14 = vcmp.eq.s32.totalorder %v2846_v21, %v80_v45 }
  0x9b   :  { %vm1885_vm12 = vmpackc.low %vm103_vm4, %vm102_vm14  ;;  %2295 = vmatpush3.bf16.msra.mxu0 %v2510_v56 }
  0x9c   :  { %2282 = vmatprep.mubr.msk.bf16.mxu0 %vm1885_vm12, %v2563_v1  ;;  %2296 = vmatprep.subr.bf16.mxu0 %v2511_v59 }
  0x9d   :  { %v89_v47 = vpop.permute.xlu1 %88  ;;  %v86_v48 = vpop.permute.xlu0 %85 }
  0x9e   :  { %vm105_vm7 = vcmp.eq.s32.totalorder %v2846_v21, %v89_v47  ;;  %vm104_vm15 = vcmp.eq.s32.totalorder %v2846_v21, %v86_v48 }
  0x9f   :  { %vm1887_vm6 = vmpackc.low %vm105_vm7, %vm104_vm15  ;;  %2297 = vmatpush3.bf16.msra.mxu0 %v2511_v59 }
  0xa0   :  { %2298 = vmatprep.subr.bf16.mxu0 %v2512_v62 }
  0xa1   :  { %v400_v51 = vpop.permute.xlu1 %399  ;;  %v397_v52 = vpop.permute.xlu0 %396 }
  0xa2   :  { %vm460_vm12 = vcmp.eq.s32.totalorder %v2846_v21, %v400_v51  ;;  %2283 = vmatmul.mubr.msk.bf16.gmra.mrb[12].mxu0 %vm1887_vm6, %v2563_v1  ;;  %vm459_vm14 = vcmp.eq.s32.totalorder %v2846_v21, %v397_v52 }
  0xa3   :  { %vm1969_vm9 = vmpackc.low %vm460_vm12, %vm459_vm14  ;;  %2299 = vmatpush3.bf16.msra.mxu0 %v2512_v62 }
  0xa4   :  { %2094 = vmatprep.subr.msk.bf16.mxu1 %vm1969_vm9, %v2563_v1  ;;  %2300 = vmatprep.subr.bf16.mxu0 %v2513_v38 }
  0xa5   :  { %v352_v54 = vpop.permute.xlu1 %351  ;;  %v349_v55 = vpop.permute.xlu0 %348 }
  0xa6   :  { %vm444_vm8 = vcmp.eq.s32.totalorder %v2846_v21, %v352_v54  ;;  %vm443_vm0 = vcmp.eq.s32.totalorder %v2846_v21, %v349_v55 }
  0xa7   :  { %vm1953_vm3 = vmpackc.low %vm444_vm8, %vm443_vm0  ;;  %2301 = vmatpush3.bf16.msra.mxu0 %v2513_v38 }
  0xa8   :  { %2095 = vmatpush3.bf16.msk.msra.mxu1 %vm1953_vm3, %v2563_v1 }
  0xa9   :  { %v406_v57 = vpop.permute.xlu1 %405  ;;  %v403_v58 = vpop.permute.xlu0 %402 }
  0xaa   :  { %vm462_vm4 = vcmp.eq.s32.totalorder %v2846_v21, %v406_v57  ;;  %vm461_vm7 = vcmp.eq.s32.totalorder %v2846_v21, %v403_v58 }
  0xab   :  { %vm1971_vm15 = vmpackc.low %vm462_vm4, %vm461_vm7 }
  0xac   :  { %2096 = vmatprep.subr.msk.bf16.mxu1 %vm1971_vm15, %v2563_v1 }
  0xad   :  { %v358_v60 = vpop.permute.xlu1 %357  ;;  %v355_v61 = vpop.permute.xlu0 %354 }
  0xae   :  { %vm446_vm6 = vcmp.eq.s32.totalorder %v2846_v21, %v358_v60  ;;  %vm445_vm12 = vcmp.eq.s32.totalorder %v2846_v21, %v355_v61 }
  0xaf   :  { %vm1955_vm14 = vmpackc.low %vm446_vm6, %vm445_vm12 }
  0xb0   :  { %2097 = vmatpush3.bf16.msk.msra.mxu1 %vm1955_vm14, %v2563_v1 }
  0xb1   :  { %v412_v63 = vpop.permute.xlu1 %411  ;;  %v409_v0 = vpop.permute.xlu0 %408 }
  0xb2   :  { %vm464_vm9 = vcmp.eq.s32.totalorder %v2846_v21, %v412_v63  ;;  %vm463_vm8 = vcmp.eq.s32.totalorder %v2846_v21, %v409_v0 }
  0xb3   :  { %vm1973_vm0 = vmpackc.low %vm464_vm9, %vm463_vm8 }
  0xb4   :  { %2098 = vmatprep.subr.msk.bf16.mxu1 %vm1973_vm0, %v2563_v1 }
  0xb5   :  { %v364_v3 = vpop.permute.xlu1 %363  ;;  %v361_v4 = vpop.permute.xlu0 %360 }
  0xb6   :  { %vm448_vm3 = vcmp.eq.s32.totalorder %v2846_v21, %v364_v3  ;;  %vm447_vm4 = vcmp.eq.s32.totalorder %v2846_v21, %v361_v4 }
  0xb7   :  { %vm1957_vm7 = vmpackc.low %vm448_vm3, %vm447_vm4 }
  0xb8   :  { %2099 = vmatpush3.bf16.msk.msra.mxu1 %vm1957_vm7, %v2563_v1 }
  0xb9   :  { %v418_v7 = vpop.permute.xlu1 %417  ;;  %v415_v8 = vpop.permute.xlu0 %414 }
  0xba   :  { %vm466_vm15 = vcmp.eq.s32.totalorder %v2846_v21, %v418_v7  ;;  %vm465_vm6 = vcmp.eq.s32.totalorder %v2846_v21, %v415_v8 }
  0xbb   :  { %vm1975_vm12 = vmpackc.low %vm466_vm15, %vm465_vm6 }
  0xbc   :  { %2100 = vmatprep.subr.msk.bf16.mxu1 %vm1975_vm12, %v2563_v1 }
  0xbd   :  { %v370_v11 = vpop.permute.xlu1 %369  ;;  %v367_v12 = vpop.permute.xlu0 %366 }
  0xbe   :  { %vm450_vm14 = vcmp.eq.s32.totalorder %v2846_v21, %v370_v11  ;;  %vm449_vm9 = vcmp.eq.s32.totalorder %v2846_v21, %v367_v12 }
  0xbf   :  { %vm1959_vm8 = vmpackc.low %vm450_vm14, %vm449_vm9 }
  0xc0   :  { %2101 = vmatpush3.bf16.msk.msra.mxu1 %vm1959_vm8, %v2563_v1 }
  0xc1   :  { %v424_v15 = vpop.permute.xlu1 %423  ;;  %v421_v16 = vpop.permute.xlu0 %420 }
  0xc2   :  { %vm468_vm0 = vcmp.eq.s32.totalorder %v2846_v21, %v424_v15  ;;  %vm467_vm3 = vcmp.eq.s32.totalorder %v2846_v21, %v421_v16 }
  0xc3   :  { %vm1977_vm4 = vmpackc.low %vm468_vm0, %vm467_vm3 }
  0xc4   :  { %2102 = vmatprep.subr.msk.bf16.mxu1 %vm1977_vm4, %v2563_v1 }
  0xc5   :  { %v376_v19 = vpop.permute.xlu1 %375  ;;  %v373_v20 = vpop.permute.xlu0 %372 }
  0xc6   :  { %vm452_vm7 = vcmp.eq.s32.totalorder %v2846_v21, %v376_v19  ;;  %vm451_vm15 = vcmp.eq.s32.totalorder %v2846_v21, %v373_v20 }
  0xc7   :  { %vm1961_vm6 = vmpackc.low %vm452_vm7, %vm451_vm15 }
  0xc8   :  { %2103 = vmatpush3.bf16.msk.msra.mxu1 %vm1961_vm6, %v2563_v1 }
  0xc9   :  { %v430_v22 = vpop.permute.xlu1 %429  ;;  %v427_v23 = vpop.permute.xlu0 %426 }
  0xca   :  { %vm470_vm12 = vcmp.eq.s32.totalorder %v2846_v21, %v430_v22  ;;  %vm469_vm14 = vcmp.eq.s32.totalorder %v2846_v21, %v427_v23 }
  0xcb   :  { %vm1979_vm9 = vmpackc.low %vm470_vm12, %vm469_vm14 }
  0xcc   :  { %2104 = vmatprep.subr.msk.bf16.mxu1 %vm1979_vm9, %v2563_v1 }
  0xcd   :  { %v382_v24 = vpop.permute.xlu1 %381  ;;  %v379_v25 = vpop.permute.xlu0 %378 }
  0xce   :  { %vm454_vm8 = vcmp.eq.s32.totalorder %v2846_v21, %v382_v24  ;;  %vm453_vm0 = vcmp.eq.s32.totalorder %v2846_v21, %v379_v25 }
  0xcf   :  { %vm1963_vm3 = vmpackc.low %vm454_vm8, %vm453_vm0 }
  0xd0   :  { %2105 = vmatpush3.bf16.msk.msra.mxu1 %vm1963_vm3, %v2563_v1 }
  0xd1   :  { %v436_v27 = vpop.permute.xlu1 %435  ;;  %v433_v28 = vpop.permute.xlu0 %432 }
  0xd2   :  { %vm472_vm4 = vcmp.eq.s32.totalorder %v2846_v21, %v436_v27  ;;  %vm471_vm7 = vcmp.eq.s32.totalorder %v2846_v21, %v433_v28 }
  0xd3   :  { %vm1981_vm15 = vmpackc.low %vm472_vm4, %vm471_vm7 }
  0xd4   :  { %2106 = vmatprep.subr.msk.bf16.mxu1 %vm1981_vm15, %v2563_v1  ;;  %vm3415_vm15 = vnez %v3392_v9 }
  0xd5   :  { %v388_v30 = vpop.permute.xlu1 %387  ;;  %v385_v31 = vpop.permute.xlu0 %384 }
  0xd6   :  { %vm456_vm6 = vcmp.eq.s32.totalorder %v2846_v21, %v388_v30  ;;  %vm455_vm12 = vcmp.eq.s32.totalorder %v2846_v21, %v385_v31 }
  0xd7   :  { %vm1965_vm14 = vmpackc.low %vm456_vm6, %vm455_vm12  ;;  %vm3416_vm6 = vnez %v3394_v10  ;;  %vm3417_vm12 = vnez %v3396_v13 }
  0xd8   :  { %2107 = vmatpush3.bf16.msk.msra.mxu1 %vm1965_vm14, %v2563_v1  ;;  %vm3421_vm14 = vnez %v3406_v29 }
  0xd9   :  { %v442_v32 = vpop.permute.xlu1 %441  ;;  %v439_v33 = vpop.permute.xlu0 %438 }
  0xda   :  { %vm474_vm9 = vcmp.eq.s32.totalorder %v2846_v21, %v442_v32  ;;  %vm473_vm8 = vcmp.eq.s32.totalorder %v2846_v21, %v439_v33 }
  0xdb   :  { %vm1983_vm0 = vmpackc.low %vm474_vm9, %vm473_vm8  ;;  %vm3422_vm9 = vnez %v3408_v34  ;;  %vm3423_vm8 = vnez %v3410_v35 }
  0xdc   :  { %2108 = vmatprep.subr.msk.bf16.mxu1 %vm1983_vm0, %v2563_v1 }
  0xdd   :  { %v394_v36 = vpop.permute.xlu1 %393  ;;  %v391_v37 = vpop.permute.xlu0 %390 }
  0xde   :  { %vm458_vm3 = vcmp.eq.s32.totalorder %v2846_v21, %v394_v36  ;;  %vm457_vm4 = vcmp.eq.s32.totalorder %v2846_v21, %v391_v37 }
  0xdf   :  { %vm1967_vm7 = vmpackc.low %vm458_vm3, %vm457_vm4 }
  0xe0   :  { %2109 = vmatpush3.bf16.msk.msra.mxu1 %vm1967_vm7, %v2563_v1 }
  0xe3   :  { %1988 = vmatmul.mubr.msk.bf16.vlgmr.msra.gmra.mrb[0].mxu1 %vm2786_vm5, %v2563_v1  ;;  %vm3418_vm5 = vnez %v3398_v14 }
  0xe4   :  { %1990 = vmatprep.mubr.msk.bf16.mxu1 %vm2796_vm10, %v2563_v1  ;;  %vm3419_vm10 = vnez %v3400_v17 }
  0xeb   :  { %1992 = vmatmul.mubr.msk.bf16.gmra.mrb[4].mxu1 %vm2800_vm11, %v2563_v1  ;;  %vm3420_vm11 = vnez %v3402_v18 }
  0xec   :  { %1994 = vmatprep.mubr.msk.bf16.mxu1 %vm3415_vm15, %v2563_v1 }
  0xf3   :  { %1996 = vmatmul.mubr.msk.bf16.gmra.mrb[8].mxu1 %vm3416_vm6, %v2563_v1 }
  0xf4   :  { %1998 = vmatprep.mubr.msk.bf16.mxu1 %vm3417_vm12, %v2563_v1 }
  0xfb   :  { %2000 = vmatmul.mubr.msk.bf16.gmra.mrb[12].mxu1 %vm3418_vm5, %v2563_v1 }
  0xfc   :  { %2002 = vmatprep.mubr.msk.bf16.mxu1 %vm3419_vm10, %v2563_v1 }
 0x103   :  { %2004 = vmatmul.mubr.msk.bf16.gmra.mrb[16].mxu1 %vm3420_vm11, %v2563_v1 }
 0x104   :  { %2006 = vmatprep.mubr.msk.bf16.mxu1 %vm2857_vm2, %v2563_v1 }
 0x10b   :  { %2008 = vmatmul.mubr.msk.bf16.gmra.mrb[20].mxu1 %vm3421_vm14, %v2563_v1 }
 0x10c   :  { %2010 = vmatprep.mubr.msk.bf16.mxu1 %vm3422_vm9, %v2563_v1 }
 0x113   :  { %2012 = vmatmul.mubr.msk.bf16.gmra.mrb[24].mxu1 %vm3423_vm8, %v2563_v1 }
 0x114   :  { %2014 = vmatprep.mubr.msk.bf16.mxu1 %vm2899_vm13, %v2563_v1 }
 0x11b   :  { %2016 = vmatmul.mubr.msk.bf16.gmra.mrb[28].mxu1 %vm2903_vm1, %v2563_v1 }
 0x15d   :  { %v2272_v2 = vpop.f32.mrb[0].mxu0 }
 0x15e   :  { %v244_v5 = vpop.f32.mrb[1].mxu0 }
 0x15f   :  { %v2273_v6 = vpop.f32.mrb[2].mxu0 }
 0x160   :  { %v308_v9 = vpack.c.bf16 %v2273_v6, %v2272_v2  ;;  %v247_v10 = vpop.f32.mrb[3].mxu0 }
 0x161   :  { %v307_v13 = vpack.c.bf16 %v247_v10, %v244_v5 }
 0x163   :  { %2302 = vmatprep.mubr.bf16.mxu0 %v307_v13 }
 0x164   :  { %2303 = vmatmul.mubr.bf16.vlgmr.msra.gmra.mrb[16].mxu0 %v308_v9 }
 0x165   :  { %v2276_v14 = vpop.f32.mrb[4].mxu0 }
 0x166   :  { %v260_v17 = vpop.f32.mrb[5].mxu0 }
 0x167   :  { %v2277_v18 = vpop.f32.mrb[6].mxu0 }
 0x168   :  { %v310_v21 = vpack.c.bf16 %v2277_v18, %v2276_v14  ;;  %v263_v26 = vpop.f32.mrb[7].mxu0  ;;  %v2514_v18 = vld [vmem:[%s3382_s4 + $0x40] sm:$0xff]  }
 0x169   :  { %v309_v29 = vpack.c.bf16 %v263_v26, %v260_v17  ;;  %2350 = vmatprep.subr.bf16.mxu1 %v2514_v18  ;;  %v2516_v26 = vld [vmem:[%s3382_s4 + $0x50] sm:$0xff]  }
 0x16a   :  { %2351 = vmatpush3.bf16.msra.mxu1 %v2514_v18 }
 0x16b   :  { %2306 = vmatprep.mubr.bf16.mxu0 %v309_v29 }
 0x16c   :  { %2307 = vmatmul.mubr.bf16.gmra.mrb[20].mxu0 %v310_v21  ;;  %v2515_v21 = vld [vmem:[%s3382_s4 + $0x48] sm:$0xff]  }
 0x16d   :  { %v2280_v34 = vpop.f32.mrb[8].mxu0  ;;  %2352 = vmatprep.subr.bf16.mxu1 %v2515_v21 }
 0x16e   :  { %v276_v35 = vpop.f32.mrb[9].mxu0  ;;  %2353 = vmatpush3.bf16.msra.mxu1 %v2515_v21 }
 0x16f   :  { %v2281_v39 = vpop.f32.mrb[10].mxu0  ;;  %2354 = vmatprep.subr.bf16.mxu1 %v2516_v26 }
 0x170   :  { %v312_v1 = vpack.c.bf16 %v2281_v39, %v2280_v34  ;;  %v279_v40 = vpop.f32.mrb[11].mxu0  ;;  %v2517_v39 = vld [vmem:[%s3382_s4 + $0x58] sm:$0xff]  }
 0x171   :  { %v311_v41 = vpack.c.bf16 %v279_v40, %v276_v35  ;;  %v2518_v40 = vld [vmem:[%s3382_s4 + $0x60] sm:$0xff]  }
 0x172   :  { %2355 = vmatpush3.bf16.msra.mxu1 %v2516_v26 }
 0x173   :  { %2310 = vmatprep.mubr.bf16.mxu0 %v311_v41  ;;  %2356 = vmatprep.subr.bf16.mxu1 %v2517_v39 }
 0x174   :  { %2311 = vmatmul.mubr.bf16.gmra.mrb[24].mxu0 %v312_v1 }
 0x175   :  { %v2284_v42 = vpop.f32.mrb[12].mxu0 }
 0x176   :  { %v292_v43 = vpop.f32.mrb[13].mxu0  ;;  %2357 = vmatpush3.bf16.msra.mxu1 %v2517_v39 }
 0x177   :  { %v2285_v44 = vpop.f32.mrb[14].mxu0  ;;  %2358 = vmatprep.subr.bf16.mxu1 %v2518_v40 }
 0x178   :  { %v314_v45 = vpack.c.bf16 %v2285_v44, %v2284_v42  ;;  %v295_v46 = vpop.f32.mrb[15].mxu0  ;;  %v2519_v44 = vld [vmem:[%s3382_s4 + $0x68] sm:$0xff]  }
 0x179   :  { %v313_v47 = vpack.c.bf16 %v295_v46, %v292_v43  ;;  %v2520_v46 = vld [vmem:[%s3382_s4 + $0x70] sm:$0xff]  }
 0x17a   :  { %2359 = vmatpush3.bf16.msra.mxu1 %v2518_v40 }
 0x17b   :  { %2314 = vmatprep.mubr.bf16.mxu0 %v313_v47  ;;  %2360 = vmatprep.subr.bf16.mxu1 %v2519_v44 }
 0x17c   :  { %2315 = vmatmul.mubr.bf16.gmra.mrb[28].mxu0 %v314_v45 }
 0x17e   :  { %2361 = vmatpush3.bf16.msra.mxu1 %v2519_v44 }
 0x17f   :  { %2362 = vmatprep.subr.bf16.mxu1 %v2520_v46 }
 0x182   :  { %2363 = vmatpush3.bf16.msra.mxu1 %v2520_v46 }
 0x1b6   :  { %v2110_v48 = vpop.f32.mrb[0].mxu1 }
 0x1b7   :  { %v2111_v49 = vpop.f32.mrb[1].mxu1 }
 0x1b8   :  { %v3031_v50 = vadd.f32 %v2111_v49, %v2110_v48  ;;  %v2113_v51 = vpop.f32.mrb[2].mxu1 }
 0x1b9   :  { %v2114_v52 = vpop.f32.mrb[3].mxu1 }
 0x1ba   :  { %v3033_v53 = vadd.f32 %v2114_v52, %v2113_v51  ;;  %790 = vadd.xlane.f32.xlu0 %v3031_v50 }
 0x1bc   :  { %792 = vadd.xlane.f32.xlu1 %v3033_v53 }
 0x1be   :  { %v2116_v54 = vpop.f32.mrb[4].mxu1 }
 0x1bf   :  { %v2117_v55 = vpop.f32.mrb[5].mxu1 }
 0x1c0   :  { %v3037_v56 = vadd.f32 %v2117_v55, %v2116_v54  ;;  %v2119_v57 = vpop.f32.mrb[6].mxu1 }
 0x1c1   :  { %v2120_v58 = vpop.f32.mrb[7].mxu1 }
 0x1c2   :  { %v3039_v59 = vadd.f32 %v2120_v58, %v2119_v57  ;;  %794 = vadd.xlane.f32.xlu0 %v3037_v56 }
 0x1c6   :  { %v2122_v60 = vpop.f32.mrb[8].mxu1  ;;  %796 = vadd.xlane.f32.xlu0 %v3039_v59 }
 0x1c7   :  { %v2123_v61 = vpop.f32.mrb[9].mxu1 }
 0x1c8   :  { %v3043_v62 = vadd.f32 %v2123_v61, %v2122_v60  ;;  %v2125_v63 = vpop.f32.mrb[10].mxu1 }
 0x1c9   :  { %v2126_v0 = vpop.f32.mrb[11].mxu1 }
 0x1ca   :  { %v3045_v3 = vadd.f32 %v2126_v0, %v2125_v63  ;;  %798 = vadd.xlane.f32.xlu1 %v3043_v62 }
 0x1cc   :  { %800 = vadd.xlane.f32.xlu0 %v3045_v3 }
 0x1ce   :  { %v2128_v4 = vpop.f32.mrb[12].mxu1 }
 0x1cf   :  { %v2129_v7 = vpop.f32.mrb[13].mxu1 }
 0x1d0   :  { %v3049_v8 = vadd.f32 %v2129_v7, %v2128_v4  ;;  %v2131_v11 = vpop.f32.mrb[14].mxu1 }
 0x1d1   :  { %v2132_v12 = vpop.f32.mrb[15].mxu1 }
 0x1d2   :  { %v3051_v15 = vadd.f32 %v2132_v12, %v2131_v11  ;;  %802 = vadd.xlane.f32.xlu1 %v3049_v8 }
 0x1d4   :  { %804 = vadd.xlane.f32.xlu0 %v3051_v15 }
 0x1d6   :  { %v2134_v16 = vpop.f32.mrb[16].mxu1 }
 0x1d7   :  { %v2135_v19 = vpop.f32.mrb[17].mxu1 }
 0x1d8   :  { %v3055_v20 = vadd.f32 %v2135_v19, %v2134_v16  ;;  %v2137_v22 = vpop.f32.mrb[18].mxu1 }
 0x1d9   :  { %v2138_v23 = vpop.f32.mrb[19].mxu1 }
 0x1da   :  { %v3057_v24 = vadd.f32 %v2138_v23, %v2137_v22  ;;  %806 = vadd.xlane.f32.xlu1 %v3055_v20 }
 0x1dc   :  { %808 = vadd.xlane.f32.xlu0 %v3057_v24 }
 0x1de   :  { %v2140_v25 = vpop.f32.mrb[20].mxu1 }
 0x1df   :  { %v2141_v27 = vpop.f32.mrb[21].mxu1 }
 0x1e0   :  { %v3061_v28 = vadd.f32 %v2141_v27, %v2140_v25  ;;  %v2143_v30 = vpop.f32.mrb[22].mxu1 }
 0x1e1   :  { %v2144_v31 = vpop.f32.mrb[23].mxu1 }
 0x1e2   :  { %v3063_v32 = vadd.f32 %v2144_v31, %v2143_v30  ;;  %810 = vadd.xlane.f32.xlu1 %v3061_v28 }
 0x1e4   :  { %812 = vadd.xlane.f32.xlu0 %v3063_v32 }
 0x1e6   :  { %v2146_v33 = vpop.f32.mrb[24].mxu1 }
 0x1e7   :  { %v2147_v36 = vpop.f32.mrb[25].mxu1 }
 0x1e8   :  { %v3067_v37 = vadd.f32 %v2147_v36, %v2146_v33  ;;  %v2149_v38 = vpop.f32.mrb[26].mxu1 }
 0x1e9   :  { %v2150_v2 = vpop.f32.mrb[27].mxu1 }
 0x1ea   :  { %v3069_v5 = vadd.f32 %v2150_v2, %v2149_v38  ;;  %814 = vadd.xlane.f32.xlu1 %v3067_v37 }
 0x1ec   :  { %816 = vadd.xlane.f32.xlu0 %v3069_v5 }
 0x1ee   :  { %v2152_v6 = vpop.f32.mrb[28].mxu1 }
 0x1ef   :  { %v2153_v9 = vpop.f32.mrb[29].mxu1 }
 0x1f0   :  { %v3073_v10 = vadd.f32 %v2153_v9, %v2152_v6  ;;  %v2155_v13 = vpop.f32.mrb[30].mxu1 }
 0x1f1   :  { %v2156_v14 = vpop.f32.mrb[31].mxu1 }
 0x1f2   :  { %v3075_v17 = vadd.f32 %v2156_v14, %v2155_v13  ;;  %818 = vadd.xlane.f32.xlu1 %v3073_v10 }
 0x1f4   :  { %820 = vadd.xlane.f32.xlu0 %v3075_v17 }
 0x237   :  { %v3088_v29 = vpop.f32.mrb[16].mxu0 }
 0x238   :  { %v1009_v34 = vpop.f32.mrb[17].mxu0 }
 0x239   :  { %v3090_v35 = vpop.f32.mrb[18].mxu0 }
 0x23a   :  { %v1012_v1 = vpop.f32.mrb[19].mxu0 }
 0x23f   :  { %v3098_v41 = vpop.f32.mrb[20].mxu0 }
 0x240   :  { %v3100_v42 = vpop.f32.mrb[21].mxu0 }
 0x241   :  { %v3102_v43 = vpop.f32.mrb[22].mxu0 }
 0x242   :  { %v3107_v45 = vpop.f32.mrb[23].mxu0 }
 0x247   :  { %v3112_v47 = vpop.f32.mrb[24].mxu0  ;;  %v791_v48 = vpop.xlane.xlu0 %790 }
 0x248   :  { %v3114_v49 = vpop.f32.mrb[25].mxu0  ;;  %v838_v51 = vmax.f32 %v791_v48, 1e-12  ;;  %vm822_vm2 = vcmp.gt.f32.partialorder %v791_v48, 0.0 }
 0x249   :  { %v3116_v52 = vpop.f32.mrb[26].mxu0  ;;  %v793_v54 = vpop.xlane.xlu1 %792 }
 0x24a   :  { %2530 = vrsqrt.f32 %v838_v51  ;;  %v3118_v55 = vpop.f32.mrb[27].mxu0  ;;  %v839_v57 = vmax.f32 %v793_v54, 1e-12  ;;  %vm823_vm13 = vcmp.gt.f32.partialorder %v793_v54, 0.0 }
 0x24c   :  { %2532 = vrsqrt.f32 %v839_v57 }
 0x24f   :  { %v3120_v58 = vpop.f32.mrb[28].mxu0  ;;  %v795_v60 = vpop.xlane.xlu0 %794 }
 0x250   :  { %v3122_v61 = vpop.f32.mrb[29].mxu0  ;;  %v840_v63 = vmax.f32 %v795_v60, 1e-12  ;;  %vm824_vm1 = vcmp.gt.f32.partialorder %v795_v60, 0.0 }
 0x251   :  { %v3124_v0 = vpop.f32.mrb[30].mxu0 }
 0x252   :  { %v3126_v4 = vpop.f32.mrb[31].mxu0  ;;  %2534 = vrsqrt.f32 %v840_v63 }
 0x253   :  { %v797_v7 = vpop.xlane.xlu0 %796 }
 0x254   :  { %v2531_v11 = vpop.eup %2530  ;;  %v841_v12 = vmax.f32 %v797_v7, 1e-12  ;;  %vm825_vm0 = vcmp.gt.f32.partialorder %v797_v7, 0.0 }
 0x255   :  { %v3128_v16 = vsel %vm822_vm2, %v2531_v11, 0.0 }
 0x256   :  { %v2533_v19 = vpop.eup %2532  ;;  %2536 = vrsqrt.f32 %v841_v12  ;;  %v1072_v27 = vmul.f32 %v1009_v34, %v3128_v16  ;;  %v886_v36 = vmul.f32 %v3031_v50, %v3128_v16 }
 0x257   :  { %v3130_v22 = vsel %vm823_vm13, %v2533_v19, 0.0  ;;  %v799_v23 = vpop.xlane.xlu1 %798 }
 0x258   :  { %v842_v25 = vmax.f32 %v799_v23, 1e-12  ;;  %v1073_v30 = vmul.f32 %v1012_v1, %v3130_v22  ;;  %v887_v31 = vmul.f32 %v3033_v53, %v3130_v22  ;;  %vm826_vm3 = vcmp.gt.f32.partialorder %v799_v23, 0.0 }
 0x259   :  { %v801_v33 = vpop.xlane.xlu0 %800 }
 0x25a   :  { %2538 = vrsqrt.f32 %v842_v25  ;;  %v843_v38 = vmax.f32 %v801_v33, 1e-12  ;;  %v1088_v2 = vpack.c.bf16 %v1073_v30, %v1072_v27  ;;  %v3138_v6 = vpack.c.bf16 %v887_v31, %v886_v36 }
 0x25b   :  { %vm827_vm4 = vcmp.gt.f32.partialorder %v801_v33, 0.0 }
 0x25c   :  { %2540 = vrsqrt.f32 %v843_v38  ;;  %2318 = vmatprep.subr.bf16.mxu0 %v1088_v2  ;;  %v2535_v9 = vpop.eup %2534  ;;  %2334 = vmatprep.mubr.bf16.mxu0 %v3138_v6 }
 0x25d   :  { %2319 = vmatpush3.bf16.msra.mxu0 %v1088_v2  ;;  %v3141_v18 = vsel %vm824_vm1, %v2535_v9, 0.0 }
 0x25e   :  { %v1074_v34 = vmul.f32 %v3088_v29, %v3141_v18 }
 0x25f   :  { %v803_v13 = vpop.xlane.xlu1 %802 }
 0x260   :  { %v2537_v14 = vpop.eup %2536  ;;  %v844_v53 = vmax.f32 %v803_v13, 1e-12  ;;  %vm828_vm7 = vcmp.gt.f32.partialorder %v803_v13, 0.0 }
 0x261   :  { %v3143_v21 = vsel %vm825_vm0, %v2537_v14, 0.0  ;;  %v805_v50 = vpop.xlane.xlu0 %804 }
 0x262   :  { %2542 = vrsqrt.f32 %v844_v53  ;;  %v845_v26 = vmax.f32 %v805_v50, 1e-12  ;;  %v1075_v39 = vmul.f32 %v3090_v35, %v3143_v21  ;;  %vm829_vm15 = vcmp.gt.f32.partialorder %v805_v50, 0.0 }
 0x264   :  { %v2539_v1 = vpop.eup %2538  ;;  %2544 = vrsqrt.f32 %v845_v26  ;;  %v1089_v44 = vpack.c.bf16 %v1075_v39, %v1074_v34 }
 0x265   :  { %v3149_v40 = vsel %vm826_vm3, %v2539_v1, 0.0 }
 0x266   :  { %v2541_v46 = vpop.eup %2540  ;;  %2320 = vmatprep.subr.bf16.mxu0 %v1089_v44  ;;  %v1076_v29 = vmul.f32 %v3100_v42, %v3149_v40 }
 0x267   :  { %v3151_v48 = vsel %vm827_vm4, %v2541_v46, 0.0  ;;  %v807_v51 = vpop.xlane.xlu1 %806  ;;  %2321 = vmatpush3.bf16.msra.mxu0 %v1089_v44 }
 0x268   :  { %v846_v54 = vmax.f32 %v807_v51, 1e-12  ;;  %v1077_v35 = vmul.f32 %v3107_v45, %v3151_v48  ;;  %vm830_vm6 = vcmp.gt.f32.partialorder %v807_v51, 0.0 }
 0x269   :  { %v809_v57 = vpop.xlane.xlu0 %808 }
 0x26a   :  { %2546 = vrsqrt.f32 %v846_v54  ;;  %v847_v60 = vmax.f32 %v809_v57, 1e-12  ;;  %v1090_v63 = vpack.c.bf16 %v1077_v35, %v1076_v29  ;;  %vm831_vm12 = vcmp.gt.f32.partialorder %v809_v57, 0.0 }
 0x26c   :  { %v2543_v7 = vpop.eup %2542  ;;  %2548 = vrsqrt.f32 %v847_v60  ;;  %2322 = vmatprep.subr.bf16.mxu0 %v1090_v63 }
 0x26d   :  { %v3157_v11 = vsel %vm828_vm7, %v2543_v7, 0.0  ;;  %2323 = vmatpush3.bf16.msra.mxu0 %v1090_v63 }
 0x26e   :  { %v2545_v12 = vpop.eup %2544  ;;  %v1078_v45 = vmul.f32 %v3098_v41, %v3157_v11 }
 0x26f   :  { %v3159_v19 = vsel %vm829_vm15, %v2545_v12, 0.0  ;;  %v811_v23 = vpop.xlane.xlu1 %810 }
 0x270   :  { %v848_v42 = vmax.f32 %v811_v23, 1e-12  ;;  %v1079_v25 = vmul.f32 %v3102_v43, %v3159_v19  ;;  %vm832_vm5 = vcmp.gt.f32.partialorder %v811_v23, 0.0 }
 0x271   :  { %v813_v27 = vpop.xlane.xlu0 %812 }
 0x272   :  { %2550 = vrsqrt.f32 %v848_v42  ;;  %v849_v30 = vmax.f32 %v813_v27, 1e-12  ;;  %v1091_v31 = vpack.c.bf16 %v1079_v25, %v1078_v45  ;;  %vm833_vm10 = vcmp.gt.f32.partialorder %v813_v27, 0.0 }
 0x274   :  { %v2547_v33 = vpop.eup %2546  ;;  %2552 = vrsqrt.f32 %v849_v30  ;;  %2324 = vmatprep.subr.bf16.mxu0 %v1091_v31  ;;  %v891_v30 = vmul.f32 %v3045_v3, %v3151_v48 }
 0x275   :  { %v3165_v36 = vsel %vm830_vm6, %v2547_v33, 0.0  ;;  %2325 = vmatpush3.bf16.msra.mxu0 %v1091_v31  ;;  %v888_v31 = vmul.f32 %v3037_v56, %v3141_v18  ;;  %v890_v33 = vmul.f32 %v3043_v62, %v3149_v40  ;;  %v892_v56 = vmul.f32 %v3049_v8, %v3157_v11 }
 0x276   :  { %v2549_v38 = vpop.eup %2548  ;;  %v1080_v43 = vmul.f32 %v3114_v49, %v3165_v36  ;;  %v894_v62 = vmul.f32 %v3055_v20, %v3165_v36 }
 0x277   :  { %v3167_v2 = vsel %vm831_vm12, %v2549_v38, 0.0  ;;  %v815_v9 = vpop.xlane.xlu1 %814 }
 0x278   :  { %v850_v41 = vmax.f32 %v815_v9, 1e-12  ;;  %v1081_v13 = vmul.f32 %v3118_v55, %v3167_v2  ;;  %vm834_vm11 = vcmp.gt.f32.partialorder %v815_v9, 0.0  ;;  %v895_v3 = vmul.f32 %v3057_v24, %v3167_v2 }
 0x279   :  { %v817_v14 = vpop.xlane.xlu0 %816 }
 0x27a   :  { %2554 = vrsqrt.f32 %v850_v41  ;;  %v851_v53 = vmax.f32 %v817_v14, 1e-12  ;;  %v1092_v50 = vpack.c.bf16 %v1081_v13, %v1080_v43  ;;  %vm835_vm14 = vcmp.gt.f32.partialorder %v817_v14, 0.0 }
 0x27b   :  { %v3221_v9 = vpack.c.bf16 %v895_v3, %v894_v62 }
 0x27c   :  { %v2551_v26 = vpop.eup %2550  ;;  %2556 = vrsqrt.f32 %v851_v53  ;;  %2326 = vmatprep.subr.bf16.mxu0 %v1092_v50 }
 0x27d   :  { %v3173_v34 = vsel %vm832_vm5, %v2551_v26, 0.0  ;;  %2327 = vmatpush3.bf16.msra.mxu0 %v1092_v50 }
 0x27e   :  { %v2553_v39 = vpop.eup %2552  ;;  %v1082_v55 = vmul.f32 %v3112_v47, %v3173_v34  ;;  %v896_v8 = vmul.f32 %v3061_v28, %v3173_v34  ;;  %v2521_v28 = vld [vmem:[%s3382_s4 + $0x78] sm:$0xff]  }
 0x27f   :  { %v3175_v1 = vsel %vm833_vm10, %v2553_v39, 0.0  ;;  %v819_v44 = vpop.xlane.xlu1 %818  ;;  %2364 = vmatprep.subr.bf16.mxu1 %v2521_v28 }
 0x280   :  { %v852_v49 = vmax.f32 %v819_v44, 1e-12  ;;  %v1083_v46 = vmul.f32 %v3116_v52, %v3175_v1  ;;  %vm836_vm9 = vcmp.gt.f32.partialorder %v819_v44, 0.0  ;;  %2365 = vmatpush3.bf16.msra.mxu1 %v2521_v28 }
 0x281   :  { %v821_v51 = vpop.xlane.xlu0 %820 }
 0x282   :  { %2558 = vrsqrt.f32 %v852_v49  ;;  %v853_v54 = vmax.f32 %v821_v51, 1e-12  ;;  %v1093_v29 = vpack.c.bf16 %v1083_v46, %v1082_v55  ;;  %vm837_vm8 = vcmp.gt.f32.partialorder %v821_v51, 0.0 }
 0x284   :  { %v2555_v35 = vpop.eup %2554  ;;  %2560 = vrsqrt.f32 %v853_v54  ;;  %2328 = vmatprep.subr.bf16.mxu0 %v1093_v29 }
 0x285   :  { %v3181_v57 = vsel %vm834_vm11, %v2555_v35, 0.0  ;;  %2329 = vmatpush3.bf16.msra.mxu0 %v1093_v29 }
 0x286   :  { %v2557_v60 = vpop.eup %2556  ;;  %v1084_v47 = vmul.f32 %v3122_v61, %v3181_v57  ;;  %v898_v20 = vmul.f32 %v3067_v37, %v3181_v57  ;;  %v2025_v37 = vld [vmem:[%s3383_s5] ss:$0 sm:$0xff] }
 0x287   :  { %v3183_v63 = vsel %vm835_vm14, %v2557_v60, 0.0 }
 0x288   :  { %v1085_v52 = vmul.f32 %v3126_v4, %v3183_v63  ;;  %v889_v4 = vmul.f32 %v3039_v59, %v3143_v21  ;;  %v893_v59 = vmul.f32 %v3051_v15, %v3159_v19  ;;  %v897_v15 = vmul.f32 %v3063_v32, %v3175_v1 }
 0x289   :  { %v899_v24 = vmul.f32 %v3069_v5, %v3183_v63 }
 0x28a   :  { %v1094_v7 = vpack.c.bf16 %v1085_v52, %v1084_v47  ;;  %v3205_v38 = vpack.c.bf16 %v889_v4, %v888_v31  ;;  %v3233_v41 = vpack.c.bf16 %v897_v15, %v896_v8 }
 0x28b   :  { %v3235_v43 = vpack.c.bf16 %v899_v24, %v898_v20 }
 0x28c   :  { %v2559_v12 = vpop.eup %2558  ;;  %2330 = vmatprep.subr.bf16.mxu0 %v1094_v7 }
 0x28d   :  { %v3189_v23 = vsel %vm836_vm9, %v2559_v12, 0.0  ;;  %2331 = vmatpush3.bf16.msra.mxu0 %v1094_v7 }
 0x28e   :  { %v2561_v42 = vpop.eup %2560  ;;  %v1086_v25 = vmul.f32 %v3120_v58, %v3189_v23  ;;  %v3207_v58 = vpack.c.bf16 %v891_v30, %v890_v33  ;;  %v900_v5 = vmul.f32 %v3073_v10, %v3189_v23 }
 0x28f   :  { %v3191_v45 = vsel %vm837_vm8, %v2561_v42, 0.0 }
 0x290   :  { %v1087_v61 = vmul.f32 %v3124_v0, %v3191_v45  ;;  %v3219_v0 = vpack.c.bf16 %v893_v59, %v892_v56  ;;  %v901_v32 = vmul.f32 %v3075_v17, %v3191_v45 }
 0x292   :  { %v1095_v27 = vpack.c.bf16 %v1087_v61, %v1086_v25  ;;  %v3243_v13 = vpack.c.bf16 %v901_v32, %v900_v5 }
 0x294   :  { %2332 = vmatprep.subr.bf16.mxu0 %v1095_v27 }
 0x295   :  { %2333 = vmatpush3.bf16.msra.mxu0 %v1095_v27 }
 0x298   :  { %2335 = vmatmul.mubr.bf16.vlgmr.msra.gmra.mrb[32].mxu0 %v3205_v38 }
 0x299   :  { %2338 = vmatprep.mubr.bf16.mxu0 %v3207_v58 }
 0x2a0   :  { %2339 = vmatmul.mubr.bf16.gmra.mrb[36].mxu0 %v3219_v0 }
 0x2a1   :  { %2342 = vmatprep.mubr.bf16.mxu0 %v3221_v9 }
 0x2a8   :  { %2343 = vmatmul.mubr.bf16.gmra.mrb[40].mxu0 %v3233_v41 }
 0x2a9   :  { %2346 = vmatprep.mubr.bf16.mxu0 %v3235_v43 }
 0x2b0   :  { %2347 = vmatmul.mubr.bf16.gmra.mrb[44].mxu0 %v3243_v13 }
 0x2b1   :  { %2398 = vmatprep.mubr.bf16.mxu0 %v3138_v6 }
 0x36b   :  { %v2336_v17 = vpop.f32.mrb[32].mxu0 }
 0x36c   :  { %v1145_v14 = vadd.f32 %v2336_v17, %v2025_v37  ;;  %v1136_v53 = vpop.f32.mrb[33].mxu0 }
 0x36d   :  { %v1137_v10 = vadd.f32 %v2025_v37, %v1136_v53  ;;  %v2337_v50 = vpop.f32.mrb[34].mxu0 }
 0x36e   :  { %v1148_v26 = vadd.f32 %v2337_v50, %v2025_v37  ;;  %v1139_v39 = vpop.f32.mrb[35].mxu0  ;;  %v1201_v49 = vmax.f32 %v1145_v14, 0.0 }
 0x36f   :  { %v1140_v44 = vadd.f32 %v2025_v37, %v1139_v39  ;;  %v1199_v46 = vmax.f32 %v1137_v10, 0.0 }
 0x370   :  { %v1202_v55 = vmax.f32 %v1148_v26, 0.0 }
 0x371   :  { %v1200_v51 = vmax.f32 %v1140_v44, 0.0 }
 0x372   :  { %v1216_v54 = vpack.c.bf16 %v1202_v55, %v1201_v49 }
 0x373   :  { %v1215_v29 = vpack.c.bf16 %v1200_v51, %v1199_v46  ;;  %v2340_v35 = vpop.f32.mrb[36].mxu0 }
 0x374   :  { %v1161_v60 = vadd.f32 %v2340_v35, %v2025_v37  ;;  %v1152_v47 = vpop.f32.mrb[37].mxu0 }
 0x375   :  { %v1153_v52 = vadd.f32 %v2025_v37, %v1152_v47  ;;  %v2341_v7 = vpop.f32.mrb[38].mxu0  ;;  %2366 = vmatprep.mubr.bf16.mxu1 %v1215_v29 }
 0x376   :  { %v1164_v12 = vadd.f32 %v2341_v7, %v2025_v37  ;;  %v1155_v42 = vpop.f32.mrb[39].mxu0  ;;  %2367 = vmatmul.mubr.bf16.vlgmr.msra.gmra.mrb[32].mxu1 %v1216_v54  ;;  %v1205_v61 = vmax.f32 %v1161_v60, 0.0  ;;  %v2523_v7 = vld [vmem:[%s3382_s4 + $0x88] sm:$0xff]  }
 0x377   :  { %v1156_v25 = vadd.f32 %v2025_v37, %v1155_v42  ;;  %v1203_v27 = vmax.f32 %v1153_v52, 0.0  ;;  %v2522_v52 = vld [vmem:[%s3382_s4 + $0x80] sm:$0xff]  }
 0x378   :  { %v1206_v4 = vmax.f32 %v1164_v12, 0.0  ;;  %2414 = vmatprep.subr.bf16.mxu1 %v2522_v52  ;;  %v2525_v12 = vld [vmem:[%s3382_s4 + $0x98] sm:$0xff]   ;;  %v2526_v42 = vld [vmem:[%s3382_s4 + $0xa0] sm:$0xff]  }
 0x379   :  { %v1204_v30 = vmax.f32 %v1156_v25, 0.0  ;;  %2415 = vmatpush3.bf16.msra.mxu1 %v2522_v52  ;;  %v2527_v25 = vld [vmem:[%s3382_s4 + $0xa8] sm:$0xff]  }
 0x37a   :  { %v1218_v31 = vpack.c.bf16 %v1206_v4, %v1205_v61  ;;  %2416 = vmatprep.subr.bf16.mxu1 %v2523_v7 }
 0x37b   :  { %v1217_v33 = vpack.c.bf16 %v1204_v30, %v1203_v27  ;;  %v2344_v59 = vpop.f32.mrb[40].mxu0 }
 0x37c   :  { %v1177_v3 = vadd.f32 %v2344_v59, %v2025_v37  ;;  %v1168_v56 = vpop.f32.mrb[41].mxu0 }
 0x37d   :  { %v1169_v62 = vadd.f32 %v2025_v37, %v1168_v56  ;;  %v2345_v15 = vpop.f32.mrb[42].mxu0  ;;  %2370 = vmatprep.mubr.bf16.mxu1 %v1217_v33  ;;  %2417 = vmatpush3.bf16.msra.mxu1 %v2523_v7 }
 0x37e   :  { %v1180_v24 = vadd.f32 %v2345_v15, %v2025_v37  ;;  %v1171_v8 = vpop.f32.mrb[43].mxu0  ;;  %2371 = vmatmul.mubr.bf16.gmra.mrb[36].mxu1 %v1218_v31  ;;  %v1209_v32 = vmax.f32 %v1177_v3, 0.0 }
 0x37f   :  { %v1172_v20 = vadd.f32 %v2025_v37, %v1171_v8  ;;  %v1207_v28 = vmax.f32 %v1169_v62, 0.0 }
 0x380   :  { %v1210_v5 = vmax.f32 %v1180_v24, 0.0 }
 0x381   :  { %v1208_v17 = vmax.f32 %v1172_v20, 0.0 }
 0x382   :  { %v1220_v14 = vpack.c.bf16 %v1210_v5, %v1209_v32 }
 0x383   :  { %v1219_v53 = vpack.c.bf16 %v1208_v17, %v1207_v28  ;;  %v2348_v10 = vpop.f32.mrb[44].mxu0 }
 0x384   :  { %v1193_v50 = vadd.f32 %v2348_v10, %v2025_v37  ;;  %v1184_v26 = vpop.f32.mrb[45].mxu0 }
 0x385   :  { %v1185_v39 = vadd.f32 %v2025_v37, %v1184_v26  ;;  %v2349_v44 = vpop.f32.mrb[46].mxu0  ;;  %2374 = vmatprep.mubr.bf16.mxu1 %v1219_v53 }
 0x386   :  { %v1196_v49 = vadd.f32 %v2349_v44, %v2025_v37  ;;  %v1187_v55 = vpop.f32.mrb[47].mxu0  ;;  %2375 = vmatmul.mubr.bf16.gmra.mrb[40].mxu1 %v1220_v14  ;;  %v1213_v51 = vmax.f32 %v1193_v50, 0.0 }
 0x387   :  { %v1188_v46 = vadd.f32 %v2025_v37, %v1187_v55  ;;  %v1211_v29 = vmax.f32 %v1185_v39, 0.0  ;;  %v2524_v37 = vld [vmem:[%s3382_s4 + $0x90] sm:$0xff]  }
 0x388   :  { %v1214_v54 = vmax.f32 %v1196_v49, 0.0  ;;  %2418 = vmatprep.subr.bf16.mxu1 %v2524_v37 }
 0x389   :  { %v1212_v35 = vmax.f32 %v1188_v46, 0.0  ;;  %2419 = vmatpush3.bf16.msra.mxu1 %v2524_v37 }
 0x38a   :  { %v1222_v60 = vpack.c.bf16 %v1214_v54, %v1213_v51  ;;  %2420 = vmatprep.subr.bf16.mxu1 %v2525_v12 }
 0x38b   :  { %v1221_v47 = vpack.c.bf16 %v1212_v35, %v1211_v29 }
 0x38d   :  { %2378 = vmatprep.mubr.bf16.mxu1 %v1221_v47  ;;  %2421 = vmatpush3.bf16.msra.mxu1 %v2525_v12 }
 0x38e   :  { %2379 = vmatmul.mubr.bf16.gmra.mrb[44].mxu1 %v1222_v60  ;;  %2422 = vmatprep.subr.bf16.mxu1 %v2526_v42 }
 0x391   :  { %2423 = vmatpush3.bf16.msra.mxu1 %v2526_v42 }
 0x392   :  { %2424 = vmatprep.subr.bf16.mxu1 %v2527_v25 }
 0x395   :  { %2425 = vmatpush3.bf16.msra.mxu1 %v2527_v25 }
 0x449   :  { %v2368_v61 = vpop.f32.mrb[32].mxu1 }
 0x44a   :  { %v1324_v4 = vpop.f32.mrb[33].mxu1  ;;  %v1389_v30 = vmul.f32 %v2368_v61, %v3141_v18  ;;  %v2528_v61 = vld [vmem:[%s3382_s4 + $0xb0] sm:$0xff]  }
 0x44b   :  { %v2369_v27 = vpop.f32.mrb[34].mxu1  ;;  %v1387_v59 = vmul.f32 %v1324_v4, %v3128_v16  ;;  %2426 = vmatprep.subr.bf16.mxu1 %v2528_v61  ;;  %v2529_v4 = vld [vmem:[%s3382_s4 + $0xb8] sm:$0xff]  }
 0x44c   :  { %v1390_v31 = vmul.f32 %v2369_v27, %v3143_v21  ;;  %v1327_v33 = vpop.f32.mrb[35].mxu1  ;;  %2427 = vmatpush3.bf16.msra.mxu1 %v2528_v61  ;;  %v2051_v27 = vld [vmem:[%s3383_s5 + $0x1] ss:$0 sm:$0xff] }
 0x44d   :  { %v1388_v3 = vmul.f32 %v1327_v33, %v3130_v22  ;;  %2428 = vmatprep.subr.bf16.mxu1 %v2529_v4 }
 0x44e   :  { %v1404_v56 = vpack.c.bf16 %v1390_v31, %v1389_v30 }
 0x44f   :  { %v1403_v62 = vpack.c.bf16 %v1388_v3, %v1387_v59 }
 0x450   :  { %2429 = vmatpush3.bf16.msra.mxu1 %v2529_v4 }
 0x451   :  { %v2372_v15 = vpop.f32.mrb[36].mxu1  ;;  %2382 = vmatprep.subr.bf16.mxu0 %v1403_v62 }
 0x452   :  { %v1340_v24 = vpop.f32.mrb[37].mxu1  ;;  %2383 = vmatpush3.bf16.msra.mxu0 %v1403_v62  ;;  %v1393_v20 = vmul.f32 %v2372_v15, %v3157_v11 }
 0x453   :  { %v2373_v8 = vpop.f32.mrb[38].mxu1  ;;  %2384 = vmatprep.subr.bf16.mxu0 %v1404_v56  ;;  %v1391_v28 = vmul.f32 %v1340_v24, %v3149_v40 }
 0x454   :  { %v1394_v32 = vmul.f32 %v2373_v8, %v3159_v19  ;;  %v1343_v5 = vpop.f32.mrb[39].mxu1 }
 0x455   :  { %v1392_v17 = vmul.f32 %v1343_v5, %v3151_v48 }
 0x456   :  { %v1406_v14 = vpack.c.bf16 %v1394_v32, %v1393_v20  ;;  %2385 = vmatpush3.bf16.msra.mxu0 %v1404_v56 }
 0x457   :  { %v1405_v53 = vpack.c.bf16 %v1392_v17, %v1391_v28 }
 0x459   :  { %v2376_v10 = vpop.f32.mrb[40].mxu1  ;;  %2386 = vmatprep.subr.bf16.mxu0 %v1405_v53 }
 0x45a   :  { %v1356_v50 = vpop.f32.mrb[41].mxu1  ;;  %2387 = vmatpush3.bf16.msra.mxu0 %v1405_v53  ;;  %v1397_v39 = vmul.f32 %v2376_v10, %v3173_v34 }
 0x45b   :  { %v2377_v26 = vpop.f32.mrb[42].mxu1  ;;  %2388 = vmatprep.subr.bf16.mxu0 %v1406_v14  ;;  %v1395_v55 = vmul.f32 %v1356_v50, %v3165_v36 }
 0x45c   :  { %v1398_v44 = vmul.f32 %v2377_v26, %v3175_v1  ;;  %v1359_v49 = vpop.f32.mrb[43].mxu1 }
 0x45d   :  { %v1396_v46 = vmul.f32 %v1359_v49, %v3167_v2 }
 0x45e   :  { %v1408_v51 = vpack.c.bf16 %v1398_v44, %v1397_v39  ;;  %2389 = vmatpush3.bf16.msra.mxu0 %v1406_v14 }
 0x45f   :  { %v1407_v54 = vpack.c.bf16 %v1396_v46, %v1395_v55 }
 0x461   :  { %v2380_v29 = vpop.f32.mrb[44].mxu1  ;;  %2390 = vmatprep.subr.bf16.mxu0 %v1407_v54 }
 0x462   :  { %v1372_v35 = vpop.f32.mrb[45].mxu1  ;;  %2391 = vmatpush3.bf16.msra.mxu0 %v1407_v54  ;;  %v1401_v47 = vmul.f32 %v2380_v29, %v3189_v23 }
 0x463   :  { %v2381_v60 = vpop.f32.mrb[46].mxu1  ;;  %2392 = vmatprep.subr.bf16.mxu0 %v1408_v51  ;;  %v1399_v37 = vmul.f32 %v1372_v35, %v3181_v57 }
 0x464   :  { %v1402_v52 = vmul.f32 %v2381_v60, %v3191_v45  ;;  %v1375_v7 = vpop.f32.mrb[47].mxu1 }
 0x465   :  { %v1400_v12 = vmul.f32 %v1375_v7, %v3183_v63 }
 0x466   :  { %v1410_v42 = vpack.c.bf16 %v1402_v52, %v1401_v47  ;;  %2393 = vmatpush3.bf16.msra.mxu0 %v1408_v51 }
 0x467   :  { %v1409_v25 = vpack.c.bf16 %v1400_v12, %v1399_v37 }
 0x469   :  { %2394 = vmatprep.subr.bf16.mxu0 %v1409_v25 }
 0x46a   :  { %2395 = vmatpush3.bf16.msra.mxu0 %v1409_v25 }
 0x46b   :  { %2396 = vmatprep.subr.bf16.mxu0 %v1410_v42 }
 0x46e   :  { %2397 = vmatpush3.bf16.msra.mxu0 %v1410_v42 }
 0x471   :  { %2399 = vmatmul.mubr.bf16.vlgmr.msra.gmra.mrb[48].mxu0 %v3205_v38 }
 0x472   :  { %2402 = vmatprep.mubr.bf16.mxu0 %v3207_v58 }
 0x479   :  { %2403 = vmatmul.mubr.bf16.gmra.mrb[52].mxu0 %v3219_v0 }
 0x47a   :  { %2406 = vmatprep.mubr.bf16.mxu0 %v3221_v9 }
 0x481   :  { %2407 = vmatmul.mubr.bf16.gmra.mrb[56].mxu0 %v3233_v41 }
 0x482   :  { %2410 = vmatprep.mubr.bf16.mxu0 %v3235_v43 }
 0x489   :  { %2411 = vmatmul.mubr.bf16.gmra.mrb[60].mxu0 %v3243_v13 }
 0x48a   :  { %2462 = vmatprep.mubr.bf16.mxu0 %v3138_v6 }
 0x544   :  { %v2400_v30 = vpop.f32.mrb[48].mxu0 }
 0x545   :  { %v1460_v31 = vadd.f32 %v2400_v30, %v2051_v27  ;;  %v1451_v33 = vpop.f32.mrb[49].mxu0 }
 0x546   :  { %v1452_v6 = vadd.f32 %v2051_v27, %v1451_v33  ;;  %v2401_v59 = vpop.f32.mrb[50].mxu0 }
 0x547   :  { %v1463_v3 = vadd.f32 %v2401_v59, %v2051_v27  ;;  %v1454_v56 = vpop.f32.mrb[51].mxu0  ;;  %v1516_v15 = vmax.f32 %v1460_v31, 0.0 }
 0x548   :  { %v1455_v62 = vadd.f32 %v2051_v27, %v1454_v56  ;;  %v1514_v8 = vmax.f32 %v1452_v6, 0.0 }
 0x549   :  { %v1517_v24 = vmax.f32 %v1463_v3, 0.0 }
 0x54a   :  { %v1515_v20 = vmax.f32 %v1455_v62, 0.0 }
 0x54b   :  { %v1531_v32 = vpack.c.bf16 %v1517_v24, %v1516_v15 }
 0x54c   :  { %v1530_v5 = vpack.c.bf16 %v1515_v20, %v1514_v8  ;;  %v2404_v28 = vpop.f32.mrb[52].mxu0 }
 0x54d   :  { %v1476_v17 = vadd.f32 %v2404_v28, %v2051_v27  ;;  %v1467_v14 = vpop.f32.mrb[53].mxu0 }
 0x54e   :  { %v1468_v53 = vadd.f32 %v2051_v27, %v1467_v14  ;;  %v2405_v10 = vpop.f32.mrb[54].mxu0  ;;  %2430 = vmatprep.mubr.bf16.mxu1 %v1530_v5 }
 0x54f   :  { %v1479_v50 = vadd.f32 %v2405_v10, %v2051_v27  ;;  %v1470_v26 = vpop.f32.mrb[55].mxu0  ;;  %2431 = vmatmul.mubr.bf16.vlgmr.msra.gmra.mrb[48].mxu1 %v1531_v32  ;;  %v1520_v44 = vmax.f32 %v1476_v17, 0.0 }
 0x550   :  { %v1471_v39 = vadd.f32 %v2051_v27, %v1470_v26  ;;  %v1518_v55 = vmax.f32 %v1468_v53, 0.0 }
 0x551   :  { %v1521_v49 = vmax.f32 %v1479_v50, 0.0 }
 0x552   :  { %v1519_v46 = vmax.f32 %v1471_v39, 0.0 }
 0x553   :  { %v1533_v51 = vpack.c.bf16 %v1521_v49, %v1520_v44 }
 0x554   :  { %v1532_v54 = vpack.c.bf16 %v1519_v46, %v1518_v55  ;;  %v2408_v29 = vpop.f32.mrb[56].mxu0 }
 0x555   :  { %v1492_v35 = vadd.f32 %v2408_v29, %v2051_v27  ;;  %v1483_v60 = vpop.f32.mrb[57].mxu0 }
 0x556   :  { %v1484_v47 = vadd.f32 %v2051_v27, %v1483_v60  ;;  %v2409_v52 = vpop.f32.mrb[58].mxu0  ;;  %2434 = vmatprep.mubr.bf16.mxu1 %v1532_v54 }
 0x557   :  { %v1495_v7 = vadd.f32 %v2409_v52, %v2051_v27  ;;  %v1486_v37 = vpop.f32.mrb[59].mxu0  ;;  %2435 = vmatmul.mubr.bf16.gmra.mrb[52].mxu1 %v1533_v51  ;;  %v1524_v42 = vmax.f32 %v1492_v35, 0.0 }
 0x558   :  { %v1487_v12 = vadd.f32 %v2051_v27, %v1486_v37  ;;  %v1522_v61 = vmax.f32 %v1484_v47, 0.0 }
 0x559   :  { %v1525_v25 = vmax.f32 %v1495_v7, 0.0 }
 0x55a   :  { %v1523_v4 = vmax.f32 %v1487_v12, 0.0 }
 0x55b   :  { %v1535_v30 = vpack.c.bf16 %v1525_v25, %v1524_v42 }
 0x55c   :  { %v1534_v31 = vpack.c.bf16 %v1523_v4, %v1522_v61  ;;  %v2412_v33 = vpop.f32.mrb[60].mxu0 }
 0x55d   :  { %v1508_v6 = vadd.f32 %v2412_v33, %v2051_v27  ;;  %v1499_v59 = vpop.f32.mrb[61].mxu0 }
 0x55e   :  { %v1500_v3 = vadd.f32 %v2051_v27, %v1499_v59  ;;  %v2413_v56 = vpop.f32.mrb[62].mxu0  ;;  %2438 = vmatprep.mubr.bf16.mxu1 %v1534_v31 }
 0x55f   :  { %v1511_v62 = vadd.f32 %v2413_v56, %v2051_v27  ;;  %v1502_v15 = vpop.f32.mrb[63].mxu0  ;;  %2439 = vmatmul.mubr.bf16.gmra.mrb[56].mxu1 %v1535_v30  ;;  %v1528_v8 = vmax.f32 %v1508_v6, 0.0 }
 0x560   :  { %v1503_v24 = vadd.f32 %v2051_v27, %v1502_v15  ;;  %v1526_v32 = vmax.f32 %v1500_v3, 0.0 }
 0x561   :  { %v1529_v20 = vmax.f32 %v1511_v62, 0.0 }
 0x562   :  { %v1527_v5 = vmax.f32 %v1503_v24, 0.0 }
 0x563   :  { %v1537_v28 = vpack.c.bf16 %v1529_v20, %v1528_v8 }
 0x564   :  { %v1536_v17 = vpack.c.bf16 %v1527_v5, %v1526_v32 }
 0x566   :  { %2442 = vmatprep.mubr.bf16.mxu1 %v1536_v17 }
 0x567   :  { %2443 = vmatmul.mubr.bf16.gmra.mrb[60].mxu1 %v1537_v28 }
 0x568   :  { %2470 = vmatprep.mubr.bf16.mxu1 %v3221_v9 }
 0x622   :  { %v2432_v14 = vpop.f32.mrb[48].mxu1 }
 0x623   :  { %v1639_v53 = vpop.f32.mrb[49].mxu1  ;;  %v1704_v50 = vmul.f32 %v2432_v14, %v3141_v18 }
 0x624   :  { %v2433_v10 = vpop.f32.mrb[50].mxu1  ;;  %v1702_v27 = vmul.f32 %v1639_v53, %v3128_v16 }
 0x625   :  { %v1705_v26 = vmul.f32 %v2433_v10, %v3143_v21  ;;  %v1642_v39 = vpop.f32.mrb[51].mxu1 }
 0x626   :  { %v1703_v44 = vmul.f32 %v1642_v39, %v3130_v22 }
 0x627   :  { %v1719_v49 = vpack.c.bf16 %v1705_v26, %v1704_v50 }
 0x628   :  { %v1718_v55 = vpack.c.bf16 %v1703_v44, %v1702_v27 }
 0x62a   :  { %v2436_v46 = vpop.f32.mrb[52].mxu1  ;;  %2446 = vmatprep.subr.bf16.mxu0 %v1718_v55  ;;  %2478 = vmatprep.subr.bf16.mxu1 %v1718_v55 }
 0x62b   :  { %v1655_v51 = vpop.f32.mrb[53].mxu1  ;;  %2447 = vmatpush3.bf16.msra.mxu0 %v1718_v55  ;;  %2486 = vmatpush3.bf16.msra.mxu1 %v1718_v55  ;;  %v1708_v18 = vmul.f32 %v2436_v46, %v3157_v11 }
 0x62c   :  { %v2437_v9 = vpop.f32.mrb[54].mxu1  ;;  %2448 = vmatprep.subr.bf16.mxu0 %v1719_v49  ;;  %2479 = vmatprep.subr.bf16.mxu1 %v1719_v49  ;;  %v1706_v16 = vmul.f32 %v1655_v51, %v3149_v40 }
 0x62d   :  { %v1709_v21 = vmul.f32 %v2437_v9, %v3159_v19  ;;  %v1658_v54 = vpop.f32.mrb[55].mxu1 }
 0x62e   :  { %v1707_v22 = vmul.f32 %v1658_v54, %v3151_v48 }
 0x62f   :  { %v1721_v29 = vpack.c.bf16 %v1709_v21, %v1708_v18  ;;  %2449 = vmatpush3.bf16.msra.mxu0 %v1719_v49  ;;  %2487 = vmatpush3.bf16.msra.mxu1 %v1719_v49 }
 0x630   :  { %v1720_v35 = vpack.c.bf16 %v1707_v22, %v1706_v16 }
 0x632   :  { %v2440_v60 = vpop.f32.mrb[56].mxu1  ;;  %2450 = vmatprep.subr.bf16.mxu0 %v1720_v35  ;;  %2480 = vmatprep.subr.bf16.mxu1 %v1720_v35 }
 0x633   :  { %v1671_v47 = vpop.f32.mrb[57].mxu1  ;;  %2451 = vmatpush3.bf16.msra.mxu0 %v1720_v35  ;;  %2488 = vmatpush3.bf16.msra.mxu1 %v1720_v35  ;;  %v1712_v11 = vmul.f32 %v2440_v60, %v3173_v34 }
 0x634   :  { %v2441_v52 = vpop.f32.mrb[58].mxu1  ;;  %2452 = vmatprep.subr.bf16.mxu0 %v1721_v29  ;;  %2481 = vmatprep.subr.bf16.mxu1 %v1721_v29  ;;  %v1710_v48 = vmul.f32 %v1671_v47, %v3165_v36 }
 0x635   :  { %v1713_v19 = vmul.f32 %v2441_v52, %v3175_v1  ;;  %v1674_v40 = vpop.f32.mrb[59].mxu1 }
 0x636   :  { %v1711_v7 = vmul.f32 %v1674_v40, %v3167_v2 }
 0x637   :  { %v1723_v37 = vpack.c.bf16 %v1713_v19, %v1712_v11  ;;  %2453 = vmatpush3.bf16.msra.mxu0 %v1721_v29  ;;  %2489 = vmatpush3.bf16.msra.mxu1 %v1721_v29 }
 0x638   :  { %v1722_v12 = vpack.c.bf16 %v1711_v7, %v1710_v48 }
 0x63a   :  { %v2444_v42 = vpop.f32.mrb[60].mxu1  ;;  %2454 = vmatprep.subr.bf16.mxu0 %v1722_v12  ;;  %2482 = vmatprep.subr.bf16.mxu1 %v1722_v12 }
 0x63b   :  { %v1687_v25 = vpop.f32.mrb[61].mxu1  ;;  %2455 = vmatpush3.bf16.msra.mxu0 %v1722_v12  ;;  %2490 = vmatpush3.bf16.msra.mxu1 %v1722_v12  ;;  %v1716_v34 = vmul.f32 %v2444_v42, %v3189_v23 }
 0x63c   :  { %v2445_v61 = vpop.f32.mrb[62].mxu1  ;;  %2456 = vmatprep.subr.bf16.mxu0 %v1723_v37  ;;  %2483 = vmatprep.subr.bf16.mxu1 %v1723_v37  ;;  %v1714_v2 = vmul.f32 %v1687_v25, %v3181_v57  ;;  %v2077_v57 = vld [vmem:[%s3383_s5 + $0x2] ss:$0 sm:$0xff] }
 0x63d   :  { %v1717_v1 = vmul.f32 %v2445_v61, %v3191_v45  ;;  %v1690_v36 = vpop.f32.mrb[63].mxu1 }
 0x63e   :  { %v1715_v4 = vmul.f32 %v1690_v36, %v3183_v63 }
 0x63f   :  { %v1725_v30 = vpack.c.bf16 %v1717_v1, %v1716_v34  ;;  %2457 = vmatpush3.bf16.msra.mxu0 %v1723_v37  ;;  %2491 = vmatpush3.bf16.msra.mxu1 %v1723_v37 }
 0x640   :  { %v1724_v31 = vpack.c.bf16 %v1715_v4, %v1714_v2 }
 0x642   :  { %2458 = vmatprep.subr.bf16.mxu0 %v1724_v31  ;;  %2484 = vmatprep.subr.bf16.mxu1 %v1724_v31 }
 0x643   :  { %2459 = vmatpush3.bf16.msra.mxu0 %v1724_v31  ;;  %2492 = vmatpush3.bf16.msra.mxu1 %v1724_v31 }
 0x644   :  { %2460 = vmatprep.subr.bf16.mxu0 %v1725_v30  ;;  %2485 = vmatprep.subr.bf16.mxu1 %v1725_v30 }
 0x647   :  { %2461 = vmatpush3.bf16.msra.mxu0 %v1725_v30  ;;  %2493 = vmatpush3.bf16.msra.mxu1 %v1725_v30 }
 0x64a   :  { %2463 = vmatmul.mubr.bf16.vlgmr.msra.gmra.mrb[64].mxu0 %v3205_v38  ;;  %2471 = vmatmul.mubr.bf16.vlgmr.msra.gmra.mrb[64].mxu1 %v3233_v41 }
 0x64b   :  { %2466 = vmatprep.mubr.bf16.mxu0 %v3207_v58  ;;  %2474 = vmatprep.mubr.bf16.mxu1 %v3235_v43 }
 0x652   :  { %2467 = vmatmul.mubr.bf16.gmra.mrb[68].mxu0 %v3219_v0  ;;  %2475 = vmatmul.mubr.bf16.gmra.mrb[68].mxu1 %v3243_v13 }
 0x71d   :  { %v2464_v63 = vpop.f32.mrb[64].mxu0  ;;  %v2472_v23 = vpop.f32.mrb[64].mxu1 }
 0x71e   :  { %v1775_v45 = vadd.f32 %v2464_v63, %v2077_v57  ;;  %v1807_v33 = vadd.f32 %v2472_v23, %v2077_v57  ;;  %v1766_v6 = vpop.f32.mrb[65].mxu0  ;;  %v1798_v38 = vpop.f32.mrb[65].mxu1 }
 0x71f   :  { %v1767_v59 = vadd.f32 %v2077_v57, %v1766_v6  ;;  %v1799_v41 = vadd.f32 %v2077_v57, %v1798_v38  ;;  %v2465_v3 = vpop.f32.mrb[66].mxu0  ;;  %v2473_v58 = vpop.f32.mrb[66].mxu1 }
 0x720   :  { %1831 = vst [vmem:[%s3384_s6 + $0x10] sm:$0xff] %v1775_v45  ;;  %1839 = vst [vmem:[%s3384_s6 + $0x50] sm:$0xff] %v1807_v33  ;;  %v1778_v0 = vadd.f32 %v2465_v3, %v2077_v57  ;;  %v1810_v43 = vadd.f32 %v2473_v58, %v2077_v57  ;;  %v1769_v13 = vpop.f32.mrb[67].mxu0  ;;  %v1801_v56 = vpop.f32.mrb[67].mxu1 }
 0x721   :  { %1829 = vst [vmem:[%s3384_s6] sm:$0xff] %v1767_v59  ;;  %1837 = vst [vmem:[%s3384_s6 + $0x40] sm:$0xff] %v1799_v41  ;;  %v1770_v62 = vadd.f32 %v2077_v57, %v1769_v13  ;;  %v1802_v15 = vadd.f32 %v2077_v57, %v1801_v56 }
 0x722   :  { %1832 = vst [vmem:[%s3384_s6 + $0x18] sm:$0xff] %v1778_v0  ;;  %1840 = vst [vmem:[%s3384_s6 + $0x58] sm:$0xff] %v1810_v43 }
 0x723   :  { %1830 = vst [vmem:[%s3384_s6 + $0x8] sm:$0xff] %v1770_v62  ;;  %1838 = vst [vmem:[%s3384_s6 + $0x48] sm:$0xff] %v1802_v15 }
 0x725   :  { %v2468_v24 = vpop.f32.mrb[68].mxu0  ;;  %v2476_v8 = vpop.f32.mrb[68].mxu1 }
 0x726   :  { %v1791_v20 = vadd.f32 %v2468_v24, %v2077_v57  ;;  %v1823_v32 = vadd.f32 %v2476_v8, %v2077_v57  ;;  %v1782_v5 = vpop.f32.mrb[69].mxu0  ;;  %v1814_v28 = vpop.f32.mrb[69].mxu1 }
 0x727   :  { %v1783_v17 = vadd.f32 %v2077_v57, %v1782_v5  ;;  %v1815_v14 = vadd.f32 %v2077_v57, %v1814_v28  ;;  %v2469_v53 = vpop.f32.mrb[70].mxu0  ;;  %v2477_v10 = vpop.f32.mrb[70].mxu1 }
 0x728   :  { %1835 = vst [vmem:[%s3384_s6 + $0x30] sm:$0xff] %v1791_v20  ;;  %1843 = vst [vmem:[%s3384_s6 + $0x70] sm:$0xff] %v1823_v32  ;;  %v1794_v50 = vadd.f32 %v2469_v53, %v2077_v57  ;;  %v1826_v26 = vadd.f32 %v2477_v10, %v2077_v57  ;;  %v1785_v39 = vpop.f32.mrb[71].mxu0  ;;  %v1817_v27 = vpop.f32.mrb[71].mxu1 }
 0x729   :  { %1833 = vst [vmem:[%s3384_s6 + $0x20] sm:$0xff] %v1783_v17  ;;  %1841 = vst [vmem:[%s3384_s6 + $0x60] sm:$0xff] %v1815_v14  ;;  %v1786_v44 = vadd.f32 %v2077_v57, %v1785_v39  ;;  %v1818_v49 = vadd.f32 %v2077_v57, %v1817_v27 }
 0x72a   :  { %1836 = vst [vmem:[%s3384_s6 + $0x38] sm:$0xff] %v1794_v50  ;;  %1844 = vst [vmem:[%s3384_s6 + $0x78] sm:$0xff] %v1826_v26 }
 0x72b   :  { %1834 = vst [vmem:[%s3384_s6 + $0x28] sm:$0xff] %v1786_v44  ;;  %1842 = vst [vmem:[%s3384_s6 + $0x68] sm:$0xff] %v1818_v49 }

</bundles_post_ra>
